<compile_context>
chip_gen: v7x
topology: tpu7x:2x2x1
jax: 0.10.0
libtpu: 0.0.40
codegen_flags: <defaults>
</compile_context>

<pallas_src>
import functools
import math

import numpy as np
import jax
import jax.numpy as jnp
from jax import lax
from jax.experimental import pallas as pl
from jax.experimental.pallas import tpu as pltpu

# ------------- configuration (WSchnet_R defaults; cls_dim shrunk for demo) -----
DIM = 64           # feature dim
CUTOFF = 5.0       # RBF high
WIDTH = 1.0        # RBF gap argument
N_CONV = 3
CLS_DIM = 256      # module default is 2000; kept small for the example
TYPE_NUM = 100

# RBFLayer(low=0, high=cutoff, gap=width, dim=1) from the DGL SchNet reference
N_CENTERS = int(np.ceil((CUTOFF - 0.0) / WIDTH))            # 5
RBF_CENTERS = np.linspace(0.0, CUTOFF, N_CENTERS)           # (5,)
RBF_GAP = float(RBF_CENTERS[1] - RBF_CENTERS[0])            # recomputed gap
RBF_COEF = -1.0 / RBF_GAP
RBF_FAN_OUT = 1 * N_CENTERS                                 # rbf_layer._fan_out


def _softplus(x, beta, threshold):
    """torch.nn.Softplus(beta, threshold): (1/beta)*log1p(exp(beta*x)), linear above threshold."""
    bx = beta * x
    safe = jnp.minimum(bx, threshold)
    return jnp.where(bx > threshold, x, jnp.log1p(jnp.exp(safe)) / beta)


def _round_up(x, m):
    return ((x + m - 1) // m) * m


# ---------------------------------- kernel -------------------------------------
def _schnet_kernel(src_sm, dst_sm,
                   node_emb_ref, dist_ref,
                   cw1_ref, cfw1_ref, cfb1_ref, cfw2_ref, cfb2_ref,
                   cw2_ref, cb2_ref, cw3_ref, cb3_ref,
                   d1w_ref, d1b_ref, d2w_ref, d2b_ref,
                   res_ref,
                   node_sc, new_node_sc, agg_sc, h_sc,
                   *, rbf_centers, rbf_coef):
    f32 = jnp.float32
    bf16 = jnp.bfloat16

    l = pl.program_id(0)                     # interaction (conv) layer
    t = pl.program_id(1)                     # edge tile
    last_l = pl.num_programs(0) - 1
    last_t = pl.num_programs(1) - 1

    e_tile = dist_ref.shape[0]
    dim = node_emb_ref.shape[1]

    # ---- one-time init: load atom embeddings into the persistent node state --
    @pl.when((l == 0) & (t == 0))
    def _init_nodes():
        node_sc[...] = node_emb_ref[...]

    # ---- per-layer init: zero aggregation, precompute node_layer1 (no bias) --
    @pl.when(t == 0)
    def _init_layer():
        agg_sc[...] = jnp.zeros_like(agg_sc)
        new_node_sc[...] = jnp.dot(node_sc[...], cw1_ref[0],
                                   preferred_element_type=f32)

    # ---- per-edge-tile edge MLP ----------------------------------------------
    dist = dist_ref[...]                                   # (E_tile, 1) f32
    w_rbf = cfw1_ref[0]                                    # (N_CENTERS, DIM) f32

    # CFConv edge network: first Linear fused with the RBF expansion as
    # N_CENTERS VPU FMAs (exp goes to the EUP slot) — no (E,5) rbf tensor.
    h = jnp.zeros((e_tile, dim), f32)
    for k, c_k in enumerate(rbf_centers):
        diff = dist - c_k
        rbf_k = jnp.exp(rbf_coef * diff * diff)            # (E_tile, 1)
        h = h + rbf_k * w_rbf[k:k + 1, :]
    h = _softplus(h + cfb1_ref[0], 0.5, 14.0)
    h = _softplus(jnp.dot(h.astype(bf16), cfw2_ref[0],
                          preferred_element_type=f32) + cfb2_ref[0],
                  0.5, 14.0)                               # (E_tile, DIM) f32
    h_sc[...] = h

    # ---- index-based gather / message / scatter-add (no one-hots) ------------
    # src/dst live in SMEM (scalar prefetch).  Padded edges have dst == -1:
    # they are masked via `valid` and their (clamped) write adds zeros to row 0.
    base = t * e_tile

    def _edge_body(e, carry):
        src_i = src_sm[base + e]
        dst_i = dst_sm[base + e]
        valid = (dst_i >= 0).astype(f32)
        dst_safe = jnp.maximum(dst_i, 0)
        nn_row = new_node_sc[pl.ds(src_i, 1), :]           # (1, DIM) f32 gather
        h_row = h_sc[pl.ds(e, 1), :]                       # (1, DIM) f32
        msg = nn_row * h_row * valid
        agg_sc[pl.ds(dst_safe, 1), :] = agg_sc[pl.ds(dst_safe, 1), :] + msg
        return carry

    lax.fori_loop(0, e_tile, _edge_body, 0)

    # ---- per-layer finalize: node_layer2 -> Softplus -> node_layer3, residual -
    @pl.when(t == last_t)
    def _finish_layer():
        cf1 = _softplus(jnp.dot(agg_sc[...], cw2_ref[0],
                                preferred_element_type=f32) + cb2_ref[0],
                        0.5, 14.0)
        node_sc[...] = node_sc[...] + jnp.dot(
            cf1, cw3_ref[0], preferred_element_type=f32) + cb3_ref[0]

    # ---- per-atom head: runs once after the last conv layer's last edge tile -
    @pl.when((l == last_l) & (t == last_t))
    def _head():
        node = node_sc[...]
        atom = jnp.dot(node, d1w_ref[...], preferred_element_type=f32) + d1b_ref[...]
        atom = _softplus(atom, 1.0, 20.0) - math.log(2.0)   # ShiftSoftplus(shift=2)
        res_ref[...] = jnp.dot(atom, d2w_ref[...],
                               preferred_element_type=f32) + d2b_ref[...]
        # NOTE: atom_classifier output is computed but never returned by the
        # PyTorch forward, so it is omitted here.


# ---------------------------------- wrapper ------------------------------------
def wschnet_r_forward(params, node_type, distance, src, dst, graph_id, num_graphs,
                      *, edge_tile=256):
    assert edge_tile % 8 == 0, "edge_tile must be a multiple of 8 (sublanes)"
    N = int(node_type.shape[0])
    E = int(distance.shape[0])
    G = int(num_graphs)
    n_pad = _round_up(N, 8)
    e_pad = _round_up(E, edge_tile)
    n_tiles = e_pad // edge_tile

    f32 = jnp.float32
    bf16 = jnp.bfloat16

    # glue: embedding gather + padding (plain JAX)
    node_emb = params["embedding"][node_type].astype(f32)
    node_emb = jnp.pad(node_emb, ((0, n_pad - N), (0, 0)))                 # (N_pad, DIM)

    dist = jnp.pad(distance.astype(f32), (0, e_pad - E)).reshape(e_pad, 1)
    src_p = jnp.pad(src.astype(jnp.int32), (0, e_pad - E))                 # pad -> 0 (safe row)
    dst_p = jnp.pad(dst.astype(jnp.int32), (0, e_pad - E),
                    constant_values=-1)                                    # pad -> -1 (masked)

    inputs = (
        node_emb, dist,
        params["conv_w1"], params["cf_w1"], params["cf_b1"],
        params["cf_w2"].astype(bf16), params["cf_b2"],
        params["conv_w2"], params["conv_b2"],
        params["conv_w3"], params["conv_b3"],
        params["d1_w"], params["d1_b"],
        params["d2_w"], params["d2_b"],
    )

    def _res(shape):                 # fully VMEM-resident block (constant index map)
        nd = len(shape)
        return pl.BlockSpec(shape, lambda l, t, *_, _nd=nd: (0,) * _nd)

    def _per_layer(shape):           # per-conv-layer weight block, indexed by l
        nd = len(shape)
        return pl.BlockSpec((1,) + shape,
                            lambda l, t, *_, _nd=nd: (l,) + (0,) * _nd)

    in_specs = [
        _res((n_pad, DIM)),                                          # node embeddings
        pl.BlockSpec((edge_tile, 1), lambda l, t, *_: (t, 0)),       # distance
        _per_layer((DIM, DIM)),                                      # conv_w1
        _per_layer((N_CENTERS, DIM)), _per_layer((1, DIM)),          # cf_w1 / cf_b1
        _per_layer((DIM, DIM)), _per_layer((1, DIM)),                # cf_w2 / cf_b2
        _per_layer((DIM, DIM)), _per_layer((1, DIM)),                # conv_w2 / conv_b2
        _per_layer((DIM, DIM)), _per_layer((1, DIM)),                # conv_w3 / conv_b3
        _res((DIM, 64)), _res((1, 64)),                              # atom_dense_layer1
        _res((64, 64)), _res((1, 64)),                               # atom_dense_layer2
    ]
    out_specs = _res((n_pad, 64))
    out_shape = jax.ShapeDtypeStruct((n_pad, 64), f32)               # g.ndata['res'] (padded)

    scratch_shapes = [
        pltpu.VMEM((n_pad, DIM), f32),      # node features (carried across grid)
        pltpu.VMEM((n_pad, DIM), f32),      # node_layer1 output (per layer)
        pltpu.VMEM((n_pad, DIM), f32),      # message aggregation accumulator
        pltpu.VMEM((edge_tile, DIM), f32),  # per-tile edge filter h
    ]

    # advisory cost estimate for XLA scheduling
    flops = N_CONV * (2 * e_pad * DIM * DIM + 2 * e_pad * N_CENTERS * DIM
                      + 4 * e_pad * DIM + 6 * n_pad * DIM * DIM)
    flops += 2 * n_pad * DIM * 64 + 2 * n_pad * 64 * 64
    transcendentals = (N_CONV * (e_pad * (N_CENTERS + 2 * DIM) + n_pad * DIM)
                       + n_pad * 64)
    bytes_accessed = sum(int(np.prod(x.shape)) * x.dtype.itemsize for x in inputs)
    bytes_accessed += (e_pad * 4 * 2) + int(np.prod(out_shape.shape)) * 4

    kernel = functools.partial(
        _schnet_kernel,
        rbf_centers=tuple(float(c) for c in RBF_CENTERS),
        rbf_coef=RBF_COEF)

    res = pl.pallas_call(
        kernel,
        out_shape=out_shape,
        grid_spec=pltpu.PrefetchScalarGridSpec(
            num_scalar_prefetch=2,             # src / dst indices -> SMEM
            grid=(N_CONV, n_tiles),
            in_specs=in_specs,
            out_specs=out_specs,
            scratch_shapes=scratch_shapes),
        compiler_params=pltpu.CompilerParams(
            # both axes carry VMEM-resident state (node features / agg
            # accumulator), so both are sequential reductions.
            dimension_semantics=("arbitrary", "arbitrary"),
            # raise the scoped-VMEM default (16/32 MiB); re-derive per chip at
            # real sizes (v7x only has 64 MiB physical VMEM).
            vmem_limit_bytes=48 * 1024 * 1024),
        cost_estimate=pl.CostEstimate(flops=flops,
                                      transcendentals=transcendentals,
                                      bytes_accessed=bytes_accessed),
    )(src_p, dst_p, *inputs)

    res = res[:N]

    # dgl.mean_nodes readout + cls/prop heads in plain XLA (tiny; keeps the
    # (G, N) readout matrix out of kernel VMEM, per perf review).
    gsum = jax.ops.segment_sum(res, graph_id, num_segments=G)
    cnt = jax.ops.segment_sum(jnp.ones((N,), f32), graph_id, num_segments=G)
    emb_g = gsum / jnp.maximum(cnt, 1.0)[:, None]
    cls_preds = emb_g @ params["cls_w"] + params["cls_b"]
    prop_preds = emb_g @ params["prop_w"] + params["prop_b"]
    return res, cls_preds, prop_preds


# ------------------------------- pure-JAX reference ----------------------------
def reference_forward(params, node_type, distance, src, dst, graph_id, num_graphs):
    node = params["embedding"][node_type].astype(jnp.float32)
    dist = distance.reshape(-1, 1).astype(jnp.float32)
    rbf = jnp.exp(RBF_COEF * (dist - jnp.asarray(RBF_CENTERS, jnp.float32)[None, :]) ** 2)
    N = node.shape[0]
    for l in range(N_CONV):
        new_node = node @ params["conv_w1"][l]
        h = _softplus(rbf @ params["cf_w1"][l] + params["cf_b1"][l], 0.5, 14.0)
        h = _softplus(h @ params["cf_w2"][l] + params["cf_b2"][l], 0.5, 14.0)
        msg = new_node[src] * h
        agg = jax.ops.segment_sum(msg, dst, num_segments=N)
        cf1 = _softplus(agg @ params["conv_w2"][l] + params["conv_b2"][l], 0.5, 14.0)
        node = node + cf1 @ params["conv_w3"][l] + params["conv_b3"][l]
    atom = node @ params["d1_w"] + params["d1_b"]
    atom = _softplus(atom, 1.0, 20.0) - math.log(2.0)
    res = atom @ params["d2_w"] + params["d2_b"]
    gsum = jax.ops.segment_sum(res, graph_id, num_segments=num_graphs)
    cnt = jax.ops.segment_sum(jnp.ones((N,), jnp.float32), graph_id,
                              num_segments=num_graphs)
    emb_g = gsum / jnp.maximum(cnt, 1.0)[:, None]
    cls = emb_g @ params["cls_w"] + params["cls_b"]
    prop = emb_g @ params["prop_w"] + params["prop_b"]
    return res, cls, prop


# ------------------------------- deterministic init ----------------------------
def init_params(key):
    ks = jax.random.split(key, 18)

    def nrm(k, shape, scale=0.1):
        return (scale * jax.random.normal(k, shape)).astype(jnp.float32)

    emb = nrm(ks[0], (TYPE_NUM, DIM))
    emb = emb.at[0].set(0.0)  # nn.Embedding(padding_idx=0)
    return dict(
        embedding=emb,
        conv_w1=nrm(ks[1], (N_CONV, DIM, DIM)),          # Interaction.node_layer1 (no bias)
        cf_w1=nrm(ks[2], (N_CONV, RBF_FAN_OUT, DIM)),    # CFConv.linear_layer1
        cf_b1=nrm(ks[3], (N_CONV, 1, DIM)),
        cf_w2=nrm(ks[4], (N_CONV, DIM, DIM)),            # CFConv.linear_layer2
        cf_b2=nrm(ks[5], (N_CONV, 1, DIM)),
        conv_w2=nrm(ks[6], (N_CONV, DIM, DIM)),          # Interaction.node_layer2
        conv_b2=nrm(ks[7], (N_CONV, 1, DIM)),
        conv_w3=nrm(ks[8], (N_CONV, DIM, DIM)),          # Interaction.node_layer3
        conv_b3=nrm(ks[9], (N_CONV, 1, DIM)),
        d1_w=nrm(ks[10], (DIM, 64)), d1_b=nrm(ks[11], (1, 64)),      # atom_dense_layer1
        d2_w=nrm(ks[12], (64, 64)), d2_b=nrm(ks[13], (1, 64)),       # atom_dense_layer2
        cls_w=nrm(ks[14], (64, CLS_DIM)), cls_b=nrm(ks[15], (1, CLS_DIM)),  # cls_classifier
        prop_w=nrm(ks[16], (64, 1)), prop_b=nrm(ks[17], (1, 1)),     # prop_regressor
        # TODO(synk): atom_classifier (64->100) weights omitted — its output is
        # never returned by WSchnet_R.forward.
    )


# ------------------------------------- main -------------------------------------
if __name__ == "__main__":
    key = jax.random.PRNGKey(0)
    pk, nk, dk, sk, tk = jax.random.split(key, 5)
    params = init_params(pk)

    N, E, G = 8, 16, 2
    node_type = jax.random.randint(nk, (N,), 1, TYPE_NUM, dtype=jnp.int32)
    distance = jax.random.uniform(dk, (E,), minval=0.1, maxval=CUTOFF, dtype=jnp.float32)
    src = jax.random.randint(sk, (E,), 0, N, dtype=jnp.int32)
    dst = jax.random.randint(tk, (E,), 0, N, dtype=jnp.int32)
    graph_id = jnp.array([0, 0, 0, 0, 1, 1, 1, 1], dtype=jnp.int32)

    # edge_tile=8 keeps the demo tiny while still exercising the multi-tile
    # accumulation path (2 edge tiles per conv layer); use 512+ at real sizes.
    res, cls_preds, prop_preds = wschnet_r_forward(
        params, node_type, distance, src, dst, graph_id, G, edge_tile=8)
    jax.block_until_ready((res, cls_preds, prop_preds))

    ref_res, ref_cls, ref_prop = reference_forward(
        params, node_type, distance, src, dst, graph_id, G)
    # tolerance accounts for the bf16 MXU operands of the edge MLP vs f32 reference
    np.testing.assert_allclose(np.asarray(res), np.asarray(ref_res), rtol=2e-2, atol=2e-2)
    np.testing.assert_allclose(np.asarray(cls_preds), np.asarray(ref_cls), rtol=2e-2, atol=2e-2)
    np.testing.assert_allclose(np.asarray(prop_preds), np.asarray(ref_prop), rtol=2e-2, atol=2e-2)

    print("KERNEL_OK")
</pallas_src>

<mosaic_0001>
module attributes {stable_mosaic.version = 11 : i64} {
  func.func @_schnet_kernel(%arg0: i32, %arg1: i32, %arg2: memref<16xi32, #tpu.memory_space<smem>>, %arg3: memref<16xi32, #tpu.memory_space<smem>>, %arg4: memref<8x64xf32, #tpu.memory_space<vmem>>, %arg5: memref<8x1xf32, #tpu.memory_space<vmem>>, %arg6: memref<1x64x64xf32, #tpu.memory_space<vmem>>, %arg7: memref<1x5x64xf32, #tpu.memory_space<vmem>>, %arg8: memref<1x1x64xf32, #tpu.memory_space<vmem>>, %arg9: memref<1x64x64xbf16, #tpu.memory_space<vmem>>, %arg10: memref<1x1x64xf32, #tpu.memory_space<vmem>>, %arg11: memref<1x64x64xf32, #tpu.memory_space<vmem>>, %arg12: memref<1x1x64xf32, #tpu.memory_space<vmem>>, %arg13: memref<1x64x64xf32, #tpu.memory_space<vmem>>, %arg14: memref<1x1x64xf32, #tpu.memory_space<vmem>>, %arg15: memref<64x64xf32, #tpu.memory_space<vmem>>, %arg16: memref<1x64xf32, #tpu.memory_space<vmem>>, %arg17: memref<64x64xf32, #tpu.memory_space<vmem>>, %arg18: memref<1x64xf32, #tpu.memory_space<vmem>>, %arg19: memref<8x64xf32, #tpu.memory_space<vmem>>, %arg20: memref<8x64xf32, #tpu.memory_space<vmem>>, %arg21: memref<8x64xf32, #tpu.memory_space<vmem>>, %arg22: memref<8x64xf32, #tpu.memory_space<vmem>>, %arg23: memref<8x64xf32, #tpu.memory_space<vmem>>) attributes {dimension_semantics = [#tpu.dimension_semantics<arbitrary>, #tpu.dimension_semantics<arbitrary>], iteration_bounds = array<i64: 3, 2>, scalar_prefetch = 2 : i64, scratch_operands = 4 : i64, tpu.core_type = #tpu.core_type<tc>, window_params = [{pipeline_mode = #tpu.pipeline_mode<synchronous>, transform_indices = @transform_0, window_bounds = array<i64: 8, 64>}, {transform_indices = @transform_1, window_bounds = array<i64: 8, 1>}, {transform_indices = @transform_2, window_bounds = array<i64: 1, 64, 64>}, {transform_indices = @transform_3, window_bounds = array<i64: 1, 5, 64>}, {transform_indices = @transform_4, window_bounds = array<i64: 1, 1, 64>}, {transform_indices = @transform_5, window_bounds = array<i64: 1, 64, 64>}, {transform_indices = @transform_6, window_bounds = array<i64: 1, 1, 64>}, {transform_indices = @transform_7, window_bounds = array<i64: 1, 64, 64>}, {transform_indices = @transform_8, window_bounds = array<i64: 1, 1, 64>}, {transform_indices = @transform_9, window_bounds = array<i64: 1, 64, 64>}, {transform_indices = @transform_10, window_bounds = array<i64: 1, 1, 64>}, {pipeline_mode = #tpu.pipeline_mode<synchronous>, transform_indices = @transform_11, window_bounds = array<i64: 64, 64>}, {pipeline_mode = #tpu.pipeline_mode<synchronous>, transform_indices = @transform_12, window_bounds = array<i64: 1, 64>}, {pipeline_mode = #tpu.pipeline_mode<synchronous>, transform_indices = @transform_13, window_bounds = array<i64: 64, 64>}, {pipeline_mode = #tpu.pipeline_mode<synchronous>, transform_indices = @transform_14, window_bounds = array<i64: 1, 64>}, {pipeline_mode = #tpu.pipeline_mode<synchronous>, transform_indices = @transform_15, window_bounds = array<i64: 8, 64>}]} {
    %c0_i32 = arith.constant 0 : i32
    %0 = arith.cmpi eq, %arg0, %c0_i32 : i32
    %c0_i32_0 = arith.constant 0 : i32
    %1 = arith.cmpi eq, %arg1, %c0_i32_0 : i32
    %2 = arith.andi %0, %1 : i1
    %3 = arith.extui %2 : i1 to i32
    %c0_i32_1 = arith.constant 0 : i32
    %4 = arith.cmpi ne, %3, %c0_i32_1 : i32
    scf.if %4 {
      %c0_45 = arith.constant 0 : index
      %c0_46 = arith.constant 0 : index
      %112 = vector.load %arg4[%c0_45, %c0_46] : memref<8x64xf32, #tpu.memory_space<vmem>>, vector<8x64xf32>
      %c0_47 = arith.constant 0 : index
      %c0_48 = arith.constant 0 : index
      %113 = vector.load %arg20[%c0_47, %c0_48] : memref<8x64xf32, #tpu.memory_space<vmem>>, vector<8x64xf32>
      tpu.vector_store %arg20[%c0_47, %c0_48], %112 {strides = array<i32>} : memref<8x64xf32, #tpu.memory_space<vmem>>, vector<8x64xf32>,
    } else {
    }
    %c0_i32_2 = arith.constant 0 : i32
    %5 = arith.cmpi eq, %arg1, %c0_i32_2 : i32
    %6 = arith.extui %5 : i1 to i32
    %c0_i32_3 = arith.constant 0 : i32
    %7 = arith.cmpi ne, %6, %c0_i32_3 : i32
    scf.if %7 {
      %cst_45 = arith.constant 0.000000e+00 : f32
      %112 = vector.broadcast %cst_45 : f32 to vector<8x64xf32>
      %c0_46 = arith.constant 0 : index
      %c0_47 = arith.constant 0 : index
      %113 = vector.load %arg22[%c0_46, %c0_47] : memref<8x64xf32, #tpu.memory_space<vmem>>, vector<8x64xf32>
      tpu.vector_store %arg22[%c0_46, %c0_47], %112 {strides = array<i32>} : memref<8x64xf32, #tpu.memory_space<vmem>>, vector<8x64xf32>,
      %c0_48 = arith.constant 0 : index
      %c0_49 = arith.constant 0 : index
      %114 = vector.load %arg20[%c0_48, %c0_49] : memref<8x64xf32, #tpu.memory_space<vmem>>, vector<8x64xf32>
      %c0_50 = arith.constant 0 : index
      %c0_51 = arith.constant 0 : index
      %c0_52 = arith.constant 0 : index
      %115 = vector.load %arg6[%c0_50, %c0_51, %c0_52] : memref<1x64x64xf32, #tpu.memory_space<vmem>>, vector<1x64x64xf32>
      %116 = vector.shape_cast %115 : vector<1x64x64xf32> to vector<64x64xf32>
      %cst_53 = arith.constant dense<0.000000e+00> : vector<8x64xf32>
      %117 = tpu.matmul %114, %116, %cst_53 {dimension_numbers = #tpu.dot_dimension_numbers<[1], [0], [0], [1], [0, 0, 1, 1], [], []>} : vector<8x64xf32>, vector<64x64xf32>, vector<8x64xf32> -> vector<8x64xf32>
      %c0_54 = arith.constant 0 : index
      %c0_55 = arith.constant 0 : index
      %118 = vector.load %arg21[%c0_54, %c0_55] : memref<8x64xf32, #tpu.memory_space<vmem>>, vector<8x64xf32>
      tpu.vector_store %arg21[%c0_54, %c0_55], %117 {strides = array<i32>} : memref<8x64xf32, #tpu.memory_space<vmem>>, vector<8x64xf32>,
    } else {
    }
    %c0 = arith.constant 0 : index
    %c0_4 = arith.constant 0 : index
    %8 = vector.load %arg5[%c0, %c0_4] : memref<8x1xf32, #tpu.memory_space<vmem>>, vector<8x1xf32>
    %c0_5 = arith.constant 0 : index
    %c0_6 = arith.constant 0 : index
    %c0_7 = arith.constant 0 : index
    %9 = vector.load %arg7[%c0_5, %c0_6, %c0_7] : memref<1x5x64xf32, #tpu.memory_space<vmem>>, vector<1x5x64xf32>
    %10 = vector.shape_cast %9 : vector<1x5x64xf32> to vector<5x64xf32>
    %cst = arith.constant 0.000000e+00 : f32
    %11 = vector.broadcast %cst : f32 to vector<8x64xf32>
    %cst_8 = arith.constant 0.000000e+00 : f32
    %12 = vector.broadcast %cst_8 : f32 to vector<8x1xf32>
    %13 = arith.subf %8, %12 : vector<8x1xf32>
    %cst_9 = arith.constant -8.000000e-01 : f32
    %14 = vector.broadcast %cst_9 : f32 to vector<8x1xf32>
    %15 = arith.mulf %14, %13 : vector<8x1xf32>
    %16 = arith.mulf %15, %13 : vector<8x1xf32>
    %17 = math.exp %16 : vector<8x1xf32>
    %18 = vector.extract_strided_slice %10 {offsets = [0, 0], sizes = [1, 64], strides = [1, 1]} : vector<5x64xf32> to vector<1x64xf32>
    %19 = vector.broadcast %17 : vector<8x1xf32> to vector<8x64xf32>
    %20 = vector.broadcast %18 : vector<1x64xf32> to vector<8x64xf32>
    %21 = arith.mulf %19, %20 : vector<8x64xf32>
    %22 = arith.addf %11, %21 : vector<8x64xf32>
    %cst_10 = arith.constant 1.250000e+00 : f32
    %23 = vector.broadcast %cst_10 : f32 to vector<8x1xf32>
    %24 = arith.subf %8, %23 : vector<8x1xf32>
    %cst_11 = arith.constant -8.000000e-01 : f32
    %25 = vector.broadcast %cst_11 : f32 to vector<8x1xf32>
    %26 = arith.mulf %25, %24 : vector<8x1xf32>
    %27 = arith.mulf %26, %24 : vector<8x1xf32>
    %28 = math.exp %27 : vector<8x1xf32>
    %29 = vector.extract_strided_slice %10 {offsets = [1, 0], sizes = [1, 64], strides = [1, 1]} : vector<5x64xf32> to vector<1x64xf32>
    %30 = vector.broadcast %28 : vector<8x1xf32> to vector<8x64xf32>
    %31 = vector.broadcast %29 : vector<1x64xf32> to vector<8x64xf32>
    %32 = arith.mulf %30, %31 : vector<8x64xf32>
    %33 = arith.addf %22, %32 : vector<8x64xf32>
    %cst_12 = arith.constant 2.500000e+00 : f32
    %34 = vector.broadcast %cst_12 : f32 to vector<8x1xf32>
    %35 = arith.subf %8, %34 : vector<8x1xf32>
    %cst_13 = arith.constant -8.000000e-01 : f32
    %36 = vector.broadcast %cst_13 : f32 to vector<8x1xf32>
    %37 = arith.mulf %36, %35 : vector<8x1xf32>
    %38 = arith.mulf %37, %35 : vector<8x1xf32>
    %39 = math.exp %38 : vector<8x1xf32>
    %40 = vector.extract_strided_slice %10 {offsets = [2, 0], sizes = [1, 64], strides = [1, 1]} : vector<5x64xf32> to vector<1x64xf32>
    %41 = vector.broadcast %39 : vector<8x1xf32> to vector<8x64xf32>
    %42 = vector.broadcast %40 : vector<1x64xf32> to vector<8x64xf32>
    %43 = arith.mulf %41, %42 : vector<8x64xf32>
    %44 = arith.addf %33, %43 : vector<8x64xf32>
    %cst_14 = arith.constant 3.750000e+00 : f32
    %45 = vector.broadcast %cst_14 : f32 to vector<8x1xf32>
    %46 = arith.subf %8, %45 : vector<8x1xf32>
    %cst_15 = arith.constant -8.000000e-01 : f32
    %47 = vector.broadcast %cst_15 : f32 to vector<8x1xf32>
    %48 = arith.mulf %47, %46 : vector<8x1xf32>
    %49 = arith.mulf %48, %46 : vector<8x1xf32>
    %50 = math.exp %49 : vector<8x1xf32>
    %51 = vector.extract_strided_slice %10 {offsets = [3, 0], sizes = [1, 64], strides = [1, 1]} : vector<5x64xf32> to vector<1x64xf32>
    %52 = vector.broadcast %50 : vector<8x1xf32> to vector<8x64xf32>
    %53 = vector.broadcast %51 : vector<1x64xf32> to vector<8x64xf32>
    %54 = arith.mulf %52, %53 : vector<8x64xf32>
    %55 = arith.addf %44, %54 : vector<8x64xf32>
    %cst_16 = arith.constant 5.000000e+00 : f32
    %56 = vector.broadcast %cst_16 : f32 to vector<8x1xf32>
    %57 = arith.subf %8, %56 : vector<8x1xf32>
    %cst_17 = arith.constant -8.000000e-01 : f32
    %58 = vector.broadcast %cst_17 : f32 to vector<8x1xf32>
    %59 = arith.mulf %58, %57 : vector<8x1xf32>
    %60 = arith.mulf %59, %57 : vector<8x1xf32>
    %61 = math.exp %60 : vector<8x1xf32>
    %62 = vector.extract_strided_slice %10 {offsets = [4, 0], sizes = [1, 64], strides = [1, 1]} : vector<5x64xf32> to vector<1x64xf32>
    %63 = vector.broadcast %61 : vector<8x1xf32> to vector<8x64xf32>
    %64 = vector.broadcast %62 : vector<1x64xf32> to vector<8x64xf32>
    %65 = arith.mulf %63, %64 : vector<8x64xf32>
    %66 = arith.addf %55, %65 : vector<8x64xf32>
    %c0_18 = arith.constant 0 : index
    %c0_19 = arith.constant 0 : index
    %c0_20 = arith.constant 0 : index
    %67 = vector.load %arg8[%c0_18, %c0_19, %c0_20] : memref<1x1x64xf32, #tpu.memory_space<vmem>>, vector<1x1x64xf32>
    %68 = vector.shape_cast %67 : vector<1x1x64xf32> to vector<1x64xf32>
    %69 = vector.broadcast %68 : vector<1x64xf32> to vector<8x64xf32>
    %70 = arith.addf %66, %69 : vector<8x64xf32>
    %cst_21 = arith.constant 5.000000e-01 : f32
    %71 = vector.broadcast %cst_21 : f32 to vector<8x64xf32>
    %72 = arith.mulf %71, %70 : vector<8x64xf32>
    %cst_22 = arith.constant 1.400000e+01 : f32
    %73 = vector.broadcast %cst_22 : f32 to vector<8x64xf32>
    %74 = arith.minimumf %72, %73 : vector<8x64xf32>
    %cst_23 = arith.constant 1.400000e+01 : f32
    %75 = vector.broadcast %cst_23 : f32 to vector<8x64xf32>
    %76 = arith.cmpf ogt, %72, %75 : vector<8x64xf32>
    %77 = math.exp %74 : vector<8x64xf32>
    %78 = math.log1p %77 : vector<8x64xf32>
    %cst_24 = arith.constant 5.000000e-01 : f32
    %79 = vector.broadcast %cst_24 : f32 to vector<8x64xf32>
    %80 = arith.divf %78, %79 : vector<8x64xf32>
    %81 = arith.select %76, %70, %80 : vector<8x64xi1>, vector<8x64xf32>
    %82 = arith.truncf %81 : vector<8x64xf32> to vector<8x64xbf16>
    %c0_25 = arith.constant 0 : index
    %c0_26 = arith.constant 0 : index
    %c0_27 = arith.constant 0 : index
    %83 = vector.load %arg9[%c0_25, %c0_26, %c0_27] : memref<1x64x64xbf16, #tpu.memory_space<vmem>>, vector<1x64x64xbf16>
    %84 = vector.shape_cast %83 : vector<1x64x64xbf16> to vector<64x64xbf16>
    %cst_28 = arith.constant dense<0.000000e+00> : vector<8x64xf32>
    %85 = tpu.matmul %82, %84, %cst_28 {dimension_numbers = #tpu.dot_dimension_numbers<[1], [0], [0], [1], [0, 0, 1, 1], [], []>} : vector<8x64xbf16>, vector<64x64xbf16>, vector<8x64xf32> -> vector<8x64xf32>
    %c0_29 = arith.constant 0 : index
    %c0_30 = arith.constant 0 : index
    %c0_31 = arith.constant 0 : index
    %86 = vector.load %arg10[%c0_29, %c0_30, %c0_31] : memref<1x1x64xf32, #tpu.memory_space<vmem>>, vector<1x1x64xf32>
    %87 = vector.shape_cast %86 : vector<1x1x64xf32> to vector<1x64xf32>
    %88 = vector.broadcast %87 : vector<1x64xf32> to vector<8x64xf32>
    %89 = arith.addf %85, %88 : vector<8x64xf32>
    %cst_32 = arith.constant 5.000000e-01 : f32
    %90 = vector.broadcast %cst_32 : f32 to vector<8x64xf32>
    %91 = arith.mulf %90, %89 : vector<8x64xf32>
    %cst_33 = arith.constant 1.400000e+01 : f32
    %92 = vector.broadcast %cst_33 : f32 to vector<8x64xf32>
    %93 = arith.minimumf %91, %92 : vector<8x64xf32>
    %cst_34 = arith.constant 1.400000e+01 : f32
    %94 = vector.broadcast %cst_34 : f32 to vector<8x64xf32>
    %95 = arith.cmpf ogt, %91, %94 : vector<8x64xf32>
    %96 = math.exp %93 : vector<8x64xf32>
    %97 = math.log1p %96 : vector<8x64xf32>
    %cst_35 = arith.constant 5.000000e-01 : f32
    %98 = vector.broadcast %cst_35 : f32 to vector<8x64xf32>
    %99 = arith.divf %97, %98 : vector<8x64xf32>
    %100 = arith.select %95, %89, %99 : vector<8x64xi1>, vector<8x64xf32>
    %c0_36 = arith.constant 0 : index
    %c0_37 = arith.constant 0 : index
    %101 = vector.load %arg23[%c0_36, %c0_37] : memref<8x64xf32, #tpu.memory_space<vmem>>, vector<8x64xf32>
    tpu.vector_store %arg23[%c0_36, %c0_37], %100 {strides = array<i32>} : memref<8x64xf32, #tpu.memory_space<vmem>>, vector<8x64xf32>,
    %c8_i32 = arith.constant 8 : i32
    %102 = arith.muli %arg1, %c8_i32 : i32
    %c0_i32_38 = arith.constant 0 : i32
    %c8_i32_39 = arith.constant 8 : i32
    %103 = arith.addi %c0_i32_38, %c8_i32_39 : i32
    %c1_i32 = arith.constant 1 : i32
    scf.for %arg24 = %c0_i32_38 to %103 step %c1_i32  : i32 {
      %112 = arith.addi %102, %arg24 : i32
      %113 = arith.index_cast %112 : i32 to index
      %114 = memref.load %arg2[%113] : memref<16xi32, #tpu.memory_space<smem>>
      %115 = arith.addi %102, %arg24 : i32
      %116 = arith.index_cast %115 : i32 to index
      %117 = memref.load %arg3[%116] : memref<16xi32, #tpu.memory_space<smem>>
      %c0_i32_45 = arith.constant 0 : i32
      %118 = arith.cmpi sge, %117, %c0_i32_45 : i32
      %119 = arith.extui %118 : i1 to i32
      %120 = arith.sitofp %119 : i32 to f32
      %c0_i32_46 = arith.constant 0 : i32
      %121 = arith.maxsi %117, %c0_i32_46 : i32
      %122 = arith.index_cast %114 : i32 to index
      %c0_47 = arith.constant 0 : index
      %123 = vector.load %arg21[%122, %c0_47] : memref<8x64xf32, #tpu.memory_space<vmem>>, vector<1x64xf32>
      %124 = arith.index_cast %arg24 : i32 to index
      %c0_48 = arith.constant 0 : index
      %125 = vector.load %arg23[%124, %c0_48] : memref<8x64xf32, #tpu.memory_space<vmem>>, vector<1x64xf32>
      %126 = arith.mulf %123, %125 : vector<1x64xf32>
      %127 = vector.broadcast %120 : f32 to vector<1x64xf32>
      %128 = arith.mulf %126, %127 : vector<1x64xf32>
      %129 = arith.index_cast %121 : i32 to index
      %c0_49 = arith.constant 0 : index
      %130 = vector.load %arg22[%129, %c0_49] : memref<8x64xf32, #tpu.memory_space<vmem>>, vector<1x64xf32>
      %131 = arith.addf %130, %128 : vector<1x64xf32>
      %132 = arith.index_cast %121 : i32 to index
      %c0_50 = arith.constant 0 : index
      %133 = vector.load %arg22[%132, %c0_50] : memref<8x64xf32, #tpu.memory_space<vmem>>, vector<1x64xf32>
      tpu.vector_store %arg22[%132, %c0_50], %131 {strides = array<i32>} : memref<8x64xf32, #tpu.memory_space<vmem>>, vector<1x64xf32>,
    }
    %c8_i32_40 = arith.constant 8 : i32
    %c1_i32_41 = arith.constant 1 : i32
    %104 = arith.cmpi eq, %arg1, %c1_i32_41 : i32
    %105 = arith.extui %104 : i1 to i32
    %c0_i32_42 = arith.constant 0 : i32
    %106 = arith.cmpi ne, %105, %c0_i32_42 : i32
    scf.if %106 {
      %c0_45 = arith.constant 0 : index
      %c0_46 = arith.constant 0 : index
      %112 = vector.load %arg22[%c0_45, %c0_46] : memref<8x64xf32, #tpu.memory_space<vmem>>, vector<8x64xf32>
      %c0_47 = arith.constant 0 : index
      %c0_48 = arith.constant 0 : index
      %c0_49 = arith.constant 0 : index
      %113 = vector.load %arg11[%c0_47, %c0_48, %c0_49] : memref<1x64x64xf32, #tpu.memory_space<vmem>>, vector<1x64x64xf32>
      %114 = vector.shape_cast %113 : vector<1x64x64xf32> to vector<64x64xf32>
      %cst_50 = arith.constant dense<0.000000e+00> : vector<8x64xf32>
      %115 = tpu.matmul %112, %114, %cst_50 {dimension_numbers = #tpu.dot_dimension_numbers<[1], [0], [0], [1], [0, 0, 1, 1], [], []>} : vector<8x64xf32>, vector<64x64xf32>, vector<8x64xf32> -> vector<8x64xf32>
      %c0_51 = arith.constant 0 : index
      %c0_52 = arith.constant 0 : index
      %c0_53 = arith.constant 0 : index
      %116 = vector.load %arg12[%c0_51, %c0_52, %c0_53] : memref<1x1x64xf32, #tpu.memory_space<vmem>>, vector<1x1x64xf32>
      %117 = vector.shape_cast %116 : vector<1x1x64xf32> to vector<1x64xf32>
      %118 = vector.broadcast %117 : vector<1x64xf32> to vector<8x64xf32>
      %119 = arith.addf %115, %118 : vector<8x64xf32>
      %cst_54 = arith.constant 5.000000e-01 : f32
      %120 = vector.broadcast %cst_54 : f32 to vector<8x64xf32>
      %121 = arith.mulf %120, %119 : vector<8x64xf32>
      %cst_55 = arith.constant 1.400000e+01 : f32
      %122 = vector.broadcast %cst_55 : f32 to vector<8x64xf32>
      %123 = arith.minimumf %121, %122 : vector<8x64xf32>
      %cst_56 = arith.constant 1.400000e+01 : f32
      %124 = vector.broadcast %cst_56 : f32 to vector<8x64xf32>
      %125 = arith.cmpf ogt, %121, %124 : vector<8x64xf32>
      %126 = math.exp %123 : vector<8x64xf32>
      %127 = math.log1p %126 : vector<8x64xf32>
      %cst_57 = arith.constant 5.000000e-01 : f32
      %128 = vector.broadcast %cst_57 : f32 to vector<8x64xf32>
      %129 = arith.divf %127, %128 : vector<8x64xf32>
      %130 = arith.select %125, %119, %129 : vector<8x64xi1>, vector<8x64xf32>
      %c0_58 = arith.constant 0 : index
      %c0_59 = arith.constant 0 : index
      %131 = vector.load %arg20[%c0_58, %c0_59] : memref<8x64xf32, #tpu.memory_space<vmem>>, vector<8x64xf32>
      %c0_60 = arith.constant 0 : index
      %c0_61 = arith.constant 0 : index
      %c0_62 = arith.constant 0 : index
      %132 = vector.load %arg13[%c0_60, %c0_61, %c0_62] : memref<1x64x64xf32, #tpu.memory_space<vmem>>, vector<1x64x64xf32>
      %133 = vector.shape_cast %132 : vector<1x64x64xf32> to vector<64x64xf32>
      %cst_63 = arith.constant dense<0.000000e+00> : vector<8x64xf32>
      %134 = tpu.matmul %130, %133, %cst_63 {dimension_numbers = #tpu.dot_dimension_numbers<[1], [0], [0], [1], [0, 0, 1, 1], [], []>} : vector<8x64xf32>, vector<64x64xf32>, vector<8x64xf32> -> vector<8x64xf32>
      %135 = arith.addf %131, %134 : vector<8x64xf32>
      %c0_64 = arith.constant 0 : index
      %c0_65 = arith.constant 0 : index
      %c0_66 = arith.constant 0 : index
      %136 = vector.load %arg14[%c0_64, %c0_65, %c0_66] : memref<1x1x64xf32, #tpu.memory_space<vmem>>, vector<1x1x64xf32>
      %137 = vector.shape_cast %136 : vector<1x1x64xf32> to vector<1x64xf32>
      %138 = vector.broadcast %137 : vector<1x64xf32> to vector<8x64xf32>
      %139 = arith.addf %135, %138 : vector<8x64xf32>
      %c0_67 = arith.constant 0 : index
      %c0_68 = arith.constant 0 : index
      %140 = vector.load %arg20[%c0_67, %c0_68] : memref<8x64xf32, #tpu.memory_space<vmem>>, vector<8x64xf32>
      tpu.vector_store %arg20[%c0_67, %c0_68], %139 {strides = array<i32>} : memref<8x64xf32, #tpu.memory_space<vmem>>, vector<8x64xf32>,
    } else {
    }
    %c2_i32 = arith.constant 2 : i32
    %107 = arith.cmpi eq, %arg0, %c2_i32 : i32
    %c1_i32_43 = arith.constant 1 : i32
    %108 = arith.cmpi eq, %arg1, %c1_i32_43 : i32
    %109 = arith.andi %107, %108 : i1
    %110 = arith.extui %109 : i1 to i32
    %c0_i32_44 = arith.constant 0 : i32
    %111 = arith.cmpi ne, %110, %c0_i32_44 : i32
    scf.if %111 {
      %c0_45 = arith.constant 0 : index
      %c0_46 = arith.constant 0 : index
      %112 = vector.load %arg20[%c0_45, %c0_46] : memref<8x64xf32, #tpu.memory_space<vmem>>, vector<8x64xf32>
      %c0_47 = arith.constant 0 : index
      %c0_48 = arith.constant 0 : index
      %113 = vector.load %arg15[%c0_47, %c0_48] : memref<64x64xf32, #tpu.memory_space<vmem>>, vector<64x64xf32>
      %cst_49 = arith.constant dense<0.000000e+00> : vector<8x64xf32>
      %114 = tpu.matmul %112, %113, %cst_49 {dimension_numbers = #tpu.dot_dimension_numbers<[1], [0], [0], [1], [0, 0, 1, 1], [], []>} : vector<8x64xf32>, vector<64x64xf32>, vector<8x64xf32> -> vector<8x64xf32>
      %c0_50 = arith.constant 0 : index
      %c0_51 = arith.constant 0 : index
      %115 = vector.load %arg16[%c0_50, %c0_51] : memref<1x64xf32, #tpu.memory_space<vmem>>, vector<1x64xf32>
      %116 = vector.broadcast %115 : vector<1x64xf32> to vector<8x64xf32>
      %117 = arith.addf %114, %116 : vector<8x64xf32>
      %cst_52 = arith.constant 1.000000e+00 : f32
      %118 = vector.broadcast %cst_52 : f32 to vector<8x64xf32>
      %119 = arith.mulf %118, %117 : vector<8x64xf32>
      %cst_53 = arith.constant 2.000000e+01 : f32
      %120 = vector.broadcast %cst_53 : f32 to vector<8x64xf32>
      %121 = arith.minimumf %119, %120 : vector<8x64xf32>
      %cst_54 = arith.constant 2.000000e+01 : f32
      %122 = vector.broadcast %cst_54 : f32 to vector<8x64xf32>
      %123 = arith.cmpf ogt, %119, %122 : vector<8x64xf32>
      %124 = math.exp %121 : vector<8x64xf32>
      %125 = math.log1p %124 : vector<8x64xf32>
      %cst_55 = arith.constant 1.000000e+00 : f32
      %126 = vector.broadcast %cst_55 : f32 to vector<8x64xf32>
      %127 = arith.divf %125, %126 : vector<8x64xf32>
      %128 = arith.select %123, %117, %127 : vector<8x64xi1>, vector<8x64xf32>
      %cst_56 = arith.constant 0.693147182 : f32
      %129 = vector.broadcast %cst_56 : f32 to vector<8x64xf32>
      %130 = arith.subf %128, %129 : vector<8x64xf32>
      %c0_57 = arith.constant 0 : index
      %c0_58 = arith.constant 0 : index
      %131 = vector.load %arg17[%c0_57, %c0_58] : memref<64x64xf32, #tpu.memory_space<vmem>>, vector<64x64xf32>
      %cst_59 = arith.constant dense<0.000000e+00> : vector<8x64xf32>
      %132 = tpu.matmul %130, %131, %cst_59 {dimension_numbers = #tpu.dot_dimension_numbers<[1], [0], [0], [1], [0, 0, 1, 1], [], []>} : vector<8x64xf32>, vector<64x64xf32>, vector<8x64xf32> -> vector<8x64xf32>
      %c0_60 = arith.constant 0 : index
      %c0_61 = arith.constant 0 : index
      %133 = vector.load %arg18[%c0_60, %c0_61] : memref<1x64xf32, #tpu.memory_space<vmem>>, vector<1x64xf32>
      %134 = vector.broadcast %133 : vector<1x64xf32> to vector<8x64xf32>
      %135 = arith.addf %132, %134 : vector<8x64xf32>
      %c0_62 = arith.constant 0 : index
      %c0_63 = arith.constant 0 : index
      %136 = vector.load %arg19[%c0_62, %c0_63] : memref<8x64xf32, #tpu.memory_space<vmem>>, vector<8x64xf32>
      tpu.vector_store %arg19[%c0_62, %c0_63], %135 {strides = array<i32>} : memref<8x64xf32, #tpu.memory_space<vmem>>, vector<8x64xf32>,
    } else {
    }
    return
  }
  func.func @transform_0(%arg0: i32, %arg1: i32, %arg2: memref<16xi32, #tpu.memory_space<smem>>, %arg3: memref<16xi32, #tpu.memory_space<smem>>) -> (i32, i32) {
    %c0_i32 = arith.constant 0 : i32
    %c0_i32_0 = arith.constant 0 : i32
    %c0_i32_1 = arith.constant 0 : i32
    return %c0_i32, %c0_i32_0 : i32, i32
  }
  func.func @transform_1(%arg0: i32, %arg1: i32, %arg2: memref<16xi32, #tpu.memory_space<smem>>, %arg3: memref<16xi32, #tpu.memory_space<smem>>) -> (i32, i32) {
    %c0_i32 = arith.constant 0 : i32
    %c0_i32_0 = arith.constant 0 : i32
    return %arg1, %c0_i32 : i32, i32
  }
  func.func @transform_2(%arg0: i32, %arg1: i32, %arg2: memref<16xi32, #tpu.memory_space<smem>>, %arg3: memref<16xi32, #tpu.memory_space<smem>>) -> (i32, i32, i32) {
    %c0_i32 = arith.constant 0 : i32
    %c0_i32_0 = arith.constant 0 : i32
    %c0_i32_1 = arith.constant 0 : i32
    return %arg0, %c0_i32, %c0_i32_0 : i32, i32, i32
  }
  func.func @transform_3(%arg0: i32, %arg1: i32, %arg2: memref<16xi32, #tpu.memory_space<smem>>, %arg3: memref<16xi32, #tpu.memory_space<smem>>) -> (i32, i32, i32) {
    %c0_i32 = arith.constant 0 : i32
    %c0_i32_0 = arith.constant 0 : i32
    %c0_i32_1 = arith.constant 0 : i32
    return %arg0, %c0_i32, %c0_i32_0 : i32, i32, i32
  }
  func.func @transform_4(%arg0: i32, %arg1: i32, %arg2: memref<16xi32, #tpu.memory_space<smem>>, %arg3: memref<16xi32, #tpu.memory_space<smem>>) -> (i32, i32, i32) {
    %c0_i32 = arith.constant 0 : i32
    %c0_i32_0 = arith.constant 0 : i32
    %c0_i32_1 = arith.constant 0 : i32
    return %arg0, %c0_i32, %c0_i32_0 : i32, i32, i32
  }
  func.func @transform_5(%arg0: i32, %arg1: i32, %arg2: memref<16xi32, #tpu.memory_space<smem>>, %arg3: memref<16xi32, #tpu.memory_space<smem>>) -> (i32, i32, i32) {
    %c0_i32 = arith.constant 0 : i32
    %c0_i32_0 = arith.constant 0 : i32
    %c0_i32_1 = arith.constant 0 : i32
    return %arg0, %c0_i32, %c0_i32_0 : i32, i32, i32
  }
  func.func @transform_6(%arg0: i32, %arg1: i32, %arg2: memref<16xi32, #tpu.memory_space<smem>>, %arg3: memref<16xi32, #tpu.memory_space<smem>>) -> (i32, i32, i32) {
    %c0_i32 = arith.constant 0 : i32
    %c0_i32_0 = arith.constant 0 : i32
    %c0_i32_1 = arith.constant 0 : i32
    return %arg0, %c0_i32, %c0_i32_0 : i32, i32, i32
  }
  func.func @transform_7(%arg0: i32, %arg1: i32, %arg2: memref<16xi32, #tpu.memory_space<smem>>, %arg3: memref<16xi32, #tpu.memory_space<smem>>) -> (i32, i32, i32) {
    %c0_i32 = arith.constant 0 : i32
    %c0_i32_0 = arith.constant 0 : i32
    %c0_i32_1 = arith.constant 0 : i32
    return %arg0, %c0_i32, %c0_i32_0 : i32, i32, i32
  }
  func.func @transform_8(%arg0: i32, %arg1: i32, %arg2: memref<16xi32, #tpu.memory_space<smem>>, %arg3: memref<16xi32, #tpu.memory_space<smem>>) -> (i32, i32, i32) {
    %c0_i32 = arith.constant 0 : i32
    %c0_i32_0 = arith.constant 0 : i32
    %c0_i32_1 = arith.constant 0 : i32
    return %arg0, %c0_i32, %c0_i32_0 : i32, i32, i32
  }
  func.func @transform_9(%arg0: i32, %arg1: i32, %arg2: memref<16xi32, #tpu.memory_space<smem>>, %arg3: memref<16xi32, #tpu.memory_space<smem>>) -> (i32, i32, i32) {
    %c0_i32 = arith.constant 0 : i32
    %c0_i32_0 = arith.constant 0 : i32
    %c0_i32_1 = arith.constant 0 : i32
    return %arg0, %c0_i32, %c0_i32_0 : i32, i32, i32
  }
  func.func @transform_10(%arg0: i32, %arg1: i32, %arg2: memref<16xi32, #tpu.memory_space<smem>>, %arg3: memref<16xi32, #tpu.memory_space<smem>>) -> (i32, i32, i32) {
    %c0_i32 = arith.constant 0 : i32
    %c0_i32_0 = arith.constant 0 : i32
    %c0_i32_1 = arith.constant 0 : i32
    return %arg0, %c0_i32, %c0_i32_0 : i32, i32, i32
  }
  func.func @transform_11(%arg0: i32, %arg1: i32, %arg2: memref<16xi32, #tpu.memory_space<smem>>, %arg3: memref<16xi32, #tpu.memory_space<smem>>) -> (i32, i32) {
    %c0_i32 = arith.constant 0 : i32
    %c0_i32_0 = arith.constant 0 : i32
    %c0_i32_1 = arith.constant 0 : i32
    return %c0_i32, %c0_i32_0 : i32, i32
  }
  func.func @transform_12(%arg0: i32, %arg1: i32, %arg2: memref<16xi32, #tpu.memory_space<smem>>, %arg3: memref<16xi32, #tpu.memory_space<smem>>) -> (i32, i32) {
    %c0_i32 = arith.constant 0 : i32
    %c0_i32_0 = arith.constant 0 : i32
    %c0_i32_1 = arith.constant 0 : i32
    return %c0_i32, %c0_i32_0 : i32, i32
  }
  func.func @transform_13(%arg0: i32, %arg1: i32, %arg2: memref<16xi32, #tpu.memory_space<smem>>, %arg3: memref<16xi32, #tpu.memory_space<smem>>) -> (i32, i32) {
    %c0_i32 = arith.constant 0 : i32
    %c0_i32_0 = arith.constant 0 : i32
    %c0_i32_1 = arith.constant 0 : i32
    return %c0_i32, %c0_i32_0 : i32, i32
  }
  func.func @transform_14(%arg0: i32, %arg1: i32, %arg2: memref<16xi32, #tpu.memory_space<smem>>, %arg3: memref<16xi32, #tpu.memory_space<smem>>) -> (i32, i32) {
    %c0_i32 = arith.constant 0 : i32
    %c0_i32_0 = arith.constant 0 : i32
    %c0_i32_1 = arith.constant 0 : i32
    return %c0_i32, %c0_i32_0 : i32, i32
  }
  func.func @transform_15(%arg0: i32, %arg1: i32, %arg2: memref<16xi32, #tpu.memory_space<smem>>, %arg3: memref<16xi32, #tpu.memory_space<smem>>) -> (i32, i32) {
    %c0_i32 = arith.constant 0 : i32
    %c0_i32_0 = arith.constant 0 : i32
    %c0_i32_1 = arith.constant 0 : i32
    return %c0_i32, %c0_i32_0 : i32, i32
  }
}

</mosaic_0001>

<bundles_post_ra>
// kernel: tpu_custom_call.1
= control target key start
LH: loop header
LB: loop body
LE: loop exit
PB: predicated region body
PF: predicated region fallthrough
CT: control target
= control target key end

     0   :  { %s3019_s0 = inlined_call_operand.vmem [shape: s32[16], index: 0, kind: input, shape index: {}]   ;;  %s3020_s2 = inlined_call_operand.vmem [shape: f32[8,64], index: 2, kind: input, shape index: {}]   ;;  %s3021_s3 = inlined_call_operand.vmem [shape: f32[16,1], index: 3, kind: input, shape index: {}]   ;;  %s3022_s4 = inlined_call_operand.hbm [shape: f32[3,64,64], index: 4, kind: input, shape index: {}]   ;;  %s3023_s5 = inlined_call_operand.vmem [shape: f32[3,5,64], index: 5, kind: input, shape index: {}]   ;;  %s3024_s6 = inlined_call_operand.vmem [shape: f32[3,1,64], index: 6, kind: input, shape index: {}]   ;;  %s3025_s7 = inlined_call_operand.hbm [shape: bf16[3,64,64], index: 7, kind: input, shape index: {}]   ;;  %s3026_s8 = inlined_call_operand.vmem [shape: f32[3,1,64], index: 8, kind: input, shape index: {}]   ;;  %s3027_s9 = inlined_call_operand.hbm [shape: f32[3,64,64], index: 9, kind: input, shape index: {}]   ;;  %s3028_s10 = inlined_call_operand.vmem [shape: f32[3,1,64], index: 10, kind: input, shape index: {}]   ;;  %s3029_s11 = inlined_call_operand.hbm [shape: f32[3,64,64], index: 11, kind: input, shape index: {}]   ;;  %s3030_s12 = inlined_call_operand.vmem [shape: f32[3,1,64], index: 12, kind: input, shape index: {}]   ;;  %s3031_s13 = inlined_call_operand.vmem [shape: f32[64,64], index: 13, kind: input, shape index: {}]   ;;  %s3032_s14 = inlined_call_operand.vmem [shape: f32[1,64], index: 14, kind: input, shape index: {}]   ;;  %s3033_s15 = inlined_call_operand.hbm [shape: f32[64,64], index: 15, kind: input, shape index: {}]   ;;  %s3034_s16 = inlined_call_operand.vmem [shape: f32[1,64], index: 16, kind: input, shape index: {}]   ;;  %s3035_s17 = inlined_call_operand.hbm [shape: f32[8,64], index: 17, kind: output, shape index: {}]   ;;  %s3036_s1 = inlined_call_operand.vmem [shape: s32[16], index: 1, kind: input, shape index: {}]  }
   0x1   :  { %3051 = sst [smem:[#allocation32_spill]] %s3019_s0  ;;  %s26_s29 = sshll.u32 %s3036_s1, 4  ;;  %s27_s29 = int_to_ptr.vmem [resolvable:$true] %s26_s29 }
   0x2   :  { %3052 = sst [smem:[#allocation33_spill]] %s3020_s2  ;;  %s3066_s26 = sld [smem:[#allocation32_spill]] }
   0x3   :  { %3053 = sst [smem:[#allocation34_spill]] %s3021_s3 }
   0x4   :  { %3054 = sst [smem:[#allocation35_spill]] %s3022_s4 }
   0x5   :  { %3055 = sst [smem:[#allocation36_spill]] %s3025_s7 }
   0x6   :  { %3056 = sst [smem:[#allocation37_spill]] %s3026_s8 }
   0x7   :  { %3057 = sst [smem:[#allocation38_spill]] %s3027_s9 }
   0x8   :  { %3058 = sst [smem:[#allocation39_spill]] %s3028_s10 }
   0x9   :  { %3059 = sst [smem:[#allocation40_spill]] %s3029_s11 }
   0xa   :  { %3060 = sst [smem:[#allocation41_spill]] %s3030_s12  ;;  %s22_s12 = sshll.u32 %s3066_s26, 4  ;;  %s23_s12 = int_to_ptr.vmem [resolvable:$true] %s22_s12 }
   0xb   :  { %3061 = sst [smem:[#allocation42_spill]] %s3031_s13  ;;  %s2124_s0 = scalar_lea.vmem %s23_s12, 16 }
   0xc   :  { %3062 = sst [smem:[#allocation43_spill]] %s3032_s14  ;;  %p2125_p0 = scmp.ne.s32.totalorder %s23_s12, %s2124_s0 }
   0xd   :  { %3063 = sst [smem:[#allocation44_spill]] %s3033_s15  ;;  %p2129_p1 = scmp.lt.s32.totalorder %s23_s12, %s23_s12 }
   0xe   :  { %3064 = sst [smem:[#allocation45_spill]] %s3034_s16  ;;  %p2130_p2 = scmp.lt.s32.totalorder %s2124_s0, %s2124_s0 }
   0xf   :  { %3065 = sst [smem:[#allocation46_spill]] %s3035_s17 }
  0x10   :  { %p2131_p3 = por %p2130_p2, %p2129_p1 }
  0x12   :  { %p2132_p4 = pnand %p2131_p3, %p2125_p0 }
  0x14   :  { %2135 = shalt.err (!%p2132_p4)  }
  0x15   :  { %s2416_s30 = smov [#allocation7]   ;;  %s2136_s18 = scalar_lea.vmem %s27_s29, 16 }
  0x16   :  { %25 = dma.vmem_to_smem %s23_s12, 16, %s2416_s30, [#allocation6] }
  0x17   :  { %p2137_p5 = scmp.ne.s32.totalorder %s27_s29, %s2136_s18  ;;  %p2141_p6 = scmp.lt.s32.totalorder %s27_s29, %s27_s29 }
  0x18   :  { %p2142_p7 = scmp.lt.s32.totalorder %s2136_s18, %s2136_s18 }
  0x1a   :  { %p2143_p8 = por %p2142_p7, %p2141_p6 }
  0x1c   :  { %p2144_p9 = pnand %p2143_p8, %p2137_p5 }
  0x1e   :  { %2147 = shalt.err (!%p2144_p9)  }
  0x1f   :  { %s2417_s19 = smov [#allocation8]  }
  0x20   :  { %29 = dma.vmem_to_smem %s27_s29, 16, %s2417_s19, [#allocation6] }
  0x21   :  { %2358 = dma.done.wait [#allocation6], 32 }
  0x22   :  { %2359 = vsyncadd [#allocation6], 4294967264 }
  0x23   :  { %31 = sfence }
  0x24   :  { %32 = vsyncpa [#allocation10], 0 }
  0x25   :  { %34 = vsyncpa [#allocation10 + $0x1], 0 }
  0x26   :  { %35 = vsyncpa [#allocation13], 0 }
  0x27   :  { %37 = vsyncpa [#allocation13 + $0x1], 0 }
  0x28   :  { %38 = vsyncpa [#allocation16], 0 }
  0x29   :  { %40 = vsyncpa [#allocation16 + $0x1], 0 }
  0x2a   :  { %41 = vsyncpa [#allocation11], 0  ;;  %s2536_s1 = smov 0   ;;  %s2538_s12 = smov 0  }
  0x2b   :  { %s2540_s2 = smov 0   ;;  %s2542_s20 = smov 0  }
  0x2c   :  { %s2544_s21 = smov 0   ;;  %s2546_s22 = smov 0  }
  0x2d   :  { %s2548_s23 = smov 0   ;;  %s2550_s24 = smov 0  }
  0x2e LB: > { %3067 = sst [smem:[#allocation25_spill]] %s2386_s12  ;;  %s2575_s25 = sadd.s32 4294967295, %s2410_s24   ;;  %s2410_s24 = sphi %s2550_s24, %s47_s24   ;;  %s2406_s23 = sphi %s2548_s23, %s3113_s23   ;;  %s2402_s22 = sphi %s2546_s22, %s3112_s22   ;;  %s2398_s21 = sphi %s2544_s21, %s3111_s21   ;;  %s2394_s20 = sphi %s2542_s20, %s3110_s20   ;;  %s2390_s2 = sphi %s2540_s2, %s3109_s2   ;;  %s2386_s12 = sphi %s2538_s12, %s3108_s12   ;;  %s2382_s1 = sphi %s2536_s1, %s3107_s1  }
  0x2f   : > { %3068 = sst [smem:[#allocation26_spill]] %s2390_s2  ;;  %p120_p10 = scmp.ne.s32.totalorder %s2390_s2, %s2386_s12 }
  0x30   : > { %3069 = sst [smem:[#allocation27_spill]] %s2402_s22  ;;  %p121_p11 = scmp.eq.s32.totalorder %s2410_s24, 0 }
  0x31   : > { %3070 = sst [smem:[#allocation28_spill]] %s2406_s23  ;;  %p126_p12 = scmp.ne.s32.totalorder %s2386_s12, %s2382_s1 }
  0x32   : > { %p3039_p13 = scmp.eq.s32.totalorder %s2575_s25, 0  ;;  %p2583_p0 = por %p121_p11, %p120_p10 }
  0x33   : > { %p1690_p1 = scmp.ge.s32.totalorder %s2410_s24, 1  ;;  %p450_p3 = scmp.lt.s32.totalorder %s2410_s24, 7 }
  0x34   : > { %s3071_s27 = scalar_select %p2583_p0, 1, 0 }
  0x35   : > { %p2590_p2 = por %p3039_p13, %p126_p12  ;;  %p2595_p4 = pnand %p1690_p1, %p450_p3 }
  0x36   : > { %s2418_s0 = smov [#allocation17]   ;;  %s56_s19 = sadd.s32 1, %s2402_s22 }
  0x37   : > { %s3072_s28 = scalar_select %p2590_p2, 1, 0 }
  0x38   : > { %s3073_s29 = scalar_select %p2595_p4, 1, 0 }
  0x39   : > { %s471_s30 = sshll.u32 %s2418_s0, 4  ;;  %p1978_p5 = pneg %p2595_p4  ;;  %s472_s30 = int_to_ptr.vmem [resolvable:$true] %s471_s30 }
  0x3a   : > { %s3075_s15 = sld [smem:[#allocation44_spill]] }
  0x3b   : > { %p2603_p6 = pnand %p1978_p5, %p3039_p13 }
  0x3d   : > { %p2150_p8 = pneg %p2603_p6 }
  0x40   : > { %s2148_s17 = scalar_lea.hbm %s3075_s15, 1024 }
  0x41   : > { %p2149_p7 = scmp.ne.s32.totalorder %s3075_s15, %s2148_s17  ;;  %p2155_p11 = scmp.lt.u32.totalorder %s2148_s17, %s3075_s15 }
  0x43   : > { %p2151_p9 = pnand %p2150_p8, %p2149_p7 }
  0x45   : > { %p2152_p10 = pneg %p2151_p9 }
  0x47   : > { %p2157_p12 = pnand %p2155_p11, %p2152_p10 }
  0x49   : > { %2160 = shalt.err (!%p2157_p12)
}
  0x4a   : > { %s2161_s10 = scalar_lea.vmem %s472_s30, 1024  ;;  %p2169_p13 = scmp.lt.s32.totalorder %s472_s30, %s472_s30 }
  0x4b   : > { %p2162_p1 = scmp.ne.s32.totalorder %s472_s30, %s2161_s10  ;;  %p2170_p2 = scmp.lt.s32.totalorder %s2161_s10, %s2161_s10 }
  0x4d   : > { %p2164_p3 = pnand %p2162_p1, %p2150_p8  ;;  %p2171_p4 = por %p2170_p2, %p2169_p13 }
  0x4f   : > { %p2165_p5 = pneg %p2164_p3 }
  0x51   : > { %p2172_p0 = pnand %p2171_p4, %p2165_p5 }
  0x53   : > { %2175 = shalt.err (!%p2172_p0)
}
  0x54   : > { %s3042_s14 = smov 128   ;;  %s3044_s13 = smov 8  }
  0x55   : > { %1981 = dma.hbm_to_vmem [thread:$0]  (!%p2603_p6), %s3075_s15, 1024, %s472_s30, [#allocation16], %s3042_s14, %s3042_s14, %s3044_s13  }
  0x56   : > { %p57_p13 = scmp.ge.s32.totalorder %s56_s19, 2  ;;  %s59_s17 = sadd.s32 1, %s2406_s23 }
  0x57   : > { %p1996_p0 = scmp.lt.s32.totalorder %s2410_s24, 6  ;;  %s2630_s26 = sand.u32 1, %s2390_s2  }
  0x58   : > { %s3115_s19 = smov (%p57_p13, %s56_s19), 0  ;;  %s3117_s17 = smov (!%p57_p13, %s59_s17), %s2406_s23 }
  0x59   : > { %3076 = sst [smem:[#allocation29_spill]] %s3115_s19  ;;  %p3077_p2 = scmp.ne.s32.totalorder %s3071_s27, 0 }
  0x5a   : > { %p61_p6 = scmp.ge.s32.totalorder %s3117_s17, 3  ;;  %s1696_s30 = sshll.u32 %s2630_s26, 5 }
  0x5b   : > { %p2637_p4 = pnand %p1996_p0, %p3077_p2  ;;  %s1742_s0 = sshll.u32 %s2406_s23, 9 }
  0x5c   : > { %s3119_s17 = smov (%p61_p6, %s3117_s17), 0  ;;  %s3080_s7 = sld [smem:[#allocation36_spill]] }
  0x5d   : > { %3079 = sst [smem:[#allocation30_spill]] %s3119_s17  ;;  %s110_s16 = ssub.s32 %s2406_s23, %s3119_s17 }
  0x5e   : > { %p111_p7 = scmp.eq.s32.totalorder %s110_s16, 0  ;;  %s533_s27 = scalar_lea.vmem [#allocation12], %s1696_s30 }
  0x5f   : > { %s540_s15 = sshll.u32 %s533_s27, 4  ;;  %s3081_s1 = sadd.s32 1, %s2390_s2  ;;  %s2653_s15 = int_to_ptr.vmem [resolvable:$true] %s540_s15 }
  0x60   : > { %s2658_s19 = scalar_select %p111_p7, %s2390_s2, %s3081_s1  }
  0x61   : > { %s3083_s22 = sand.u32 1, %s2410_s24   ;;  %p2668_p9 = pneg %p2637_p4 }
  0x62   : > { %s2651_s13 = scalar_lea.hbm %s3080_s7, %s1742_s0  ;;  %3082 = sst [smem:[#allocation31_spill]] %s2658_s19 }
  0x63   : > { %s2662_s8 = scalar_lea.sflag [#allocation13], %s3083_s22  ;;  %s2176_s17 = scalar_lea.hbm %s2651_s13, 512 }
  0x64   : > { %p2177_p8 = scmp.ne.s32.totalorder %s2651_s13, %s2176_s17  ;;  %s2181_s16 = scalar_lea.hbm %s3080_s7, 1536 }
  0x65   : > { %p2182_p12 = scmp.lt.u32.totalorder %s2651_s13, %s3080_s7  ;;  %p2183_p1 = scmp.lt.u32.totalorder %s2181_s16, %s2176_s17 }
  0x66   : > { %p2179_p10 = pnand %p2668_p9, %p2177_p8  ;;  %p2185_p5 = scmp.lt.u32.totalorder %s2176_s17, %s2651_s13 }
  0x67   : > { %p2184_p3 = por %p2183_p1, %p2182_p12 }
  0x68   : > { %p2180_p11 = pneg %p2179_p10 }
  0x69   : > { %p2186_p13 = por %p2185_p5, %p2184_p3 }
  0x6b   : > { %p2187_p0 = pnand %p2186_p13, %p2180_p11 }
  0x6d   : > { %2190 = shalt.err (!%p2187_p0)
}
  0x6e   : > { %s2191_s22 = scalar_lea.vmem %s2653_s15, 512  ;;  %s2421_s27 = smov [#allocation12]  }
  0x6f   : > { %p2192_p2 = scmp.ne.s32.totalorder %s2653_s15, %s2191_s22  ;;  %s2196_s30 = sshll.u32 %s2421_s27, 4  ;;  %s2197_s30 = int_to_ptr.vmem [resolvable:$false] %s2196_s30 }
  0x70   : > { %s2198_s0 = scalar_lea.vmem %s2197_s30, 1024  ;;  %p2199_p8 = scmp.lt.s32.totalorder %s2653_s15, %s2197_s30 }
  0x71   : > { %p2194_p6 = pnand %p2192_p2, %p2668_p9  ;;  %p2200_p10 = scmp.lt.s32.totalorder %s2198_s0, %s2191_s22 }
  0x73   : > { %p2195_p7 = pneg %p2194_p6  ;;  %p2201_p12 = por %p2200_p10, %p2199_p8 }
  0x75   : > { %p2202_p1 = pnand %p2201_p12, %p2195_p7 }
  0x77   : > { %2205 = shalt.err (!%p2202_p1)
}
  0x78   : > { %s2422_s17 = smov 64   ;;  %s2423_s16 = smov 4  }
  0x79   : > { %1988 = dma.hbm_to_vmem [thread:$0]  (!%p2637_p4), %s2651_s13, 512, %s2653_s15, %s2662_s8, %s2422_s17, %s2422_s17, %s2423_s16  }
  0x7a   : > { %s2693_s1 = sshll.u32 %s2630_s26, 6  ;;  %s2696_s10 = sshll.u32 %s2406_s23, 10 }
  0x7b   : > { %s3085_s4 = sld [smem:[#allocation35_spill]]  ;;  %s499_s0 = scalar_lea.vmem [#allocation9], %s2693_s1 }
  0x7c   : > { %s506_s7 = sshll.u32 %s499_s0, 4  ;;  %s496_s15 = scalar_lea.sflag [#allocation10], %s2630_s26  ;;  %s2705_s7 = int_to_ptr.vmem [resolvable:$true] %s506_s7 }
  0x81   : > { %s2702_s30 = scalar_lea.hbm %s3085_s4, %s2696_s10  ;;  %s2211_s22 = scalar_lea.hbm %s3085_s4, 3072 }
  0x82   : > { %s2206_s13 = scalar_lea.hbm %s2702_s30, 1024  ;;  %p2212_p13 = scmp.lt.u32.totalorder %s2702_s30, %s3085_s4 }
  0x83   : > { %p2207_p11 = scmp.ne.s32.totalorder %s2702_s30, %s2206_s13  ;;  %p2213_p0 = scmp.lt.u32.totalorder %s2211_s22, %s2206_s13 }
  0x84   : > { %p2215_p6 = scmp.lt.u32.totalorder %s2206_s13, %s2702_s30 }
  0x85   : > { %p2209_p3 = pnand %p2207_p11, %p2668_p9  ;;  %p2214_p2 = por %p2213_p0, %p2212_p13 }
  0x87   : > { %p2210_p5 = pneg %p2209_p3  ;;  %p2216_p7 = por %p2215_p6, %p2214_p2 }
  0x89   : > { %p2217_p8 = pnand %p2216_p7, %p2210_p5 }
  0x8b   : > { %2220 = shalt.err (!%p2217_p8)
}
  0x8c   : > { %s2221_s0 = scalar_lea.vmem %s2705_s7, 1024  ;;  %s2424_s17 = smov [#allocation9]  }
  0x8d   : > { %p2222_p10 = scmp.ne.s32.totalorder %s2705_s7, %s2221_s0  ;;  %s2226_s16 = sshll.u32 %s2424_s17, 4  ;;  %s2227_s16 = int_to_ptr.vmem [resolvable:$false] %s2226_s16 }
  0x8e   : > { %s2228_s23 = scalar_lea.vmem %s2227_s16, 2048  ;;  %p2229_p11 = scmp.lt.s32.totalorder %s2705_s7, %s2227_s16 }
  0x8f   : > { %p2224_p12 = pnand %p2222_p10, %p2668_p9  ;;  %p2230_p3 = scmp.lt.s32.totalorder %s2228_s23, %s2221_s0 }
  0x91   : > { %p2225_p1 = pneg %p2224_p12  ;;  %p2231_p13 = por %p2230_p3, %p2229_p11 }
  0x93   : > { %p2232_p0 = pnand %p2231_p13, %p2225_p1 }
  0x95   : > { %2235 = shalt.err (!%p2232_p0)
}
  0x96   : > { %s3086_s13 = smov 8   ;;  %s3087_s22 = smov 128  }
  0x97   : > { %1985 = dma.hbm_to_vmem [thread:$0]  (!%p2637_p4), %s2702_s30, 1024, %s2705_s7, %s496_s15, %s3087_s22, %s3087_s22, %s3086_s13  }
  0x98   : > { %s3088_s9 = sld [smem:[#allocation38_spill]]  ;;  %s560_s16 = scalar_lea.vmem [#allocation14], %s2693_s1 }
  0x99   : > { %s567_s23 = sshll.u32 %s560_s16, 4  ;;  %s2741_s23 = int_to_ptr.vmem [resolvable:$true] %s567_s23 }
  0x9e   : > { %s2738_s0 = scalar_lea.hbm %s3088_s9, %s2696_s10  ;;  %s2241_s30 = scalar_lea.hbm %s3088_s9, 3072 }
  0x9f   : > { %s2236_s26 = scalar_lea.hbm %s2738_s0, 1024  ;;  %p2242_p7 = scmp.lt.u32.totalorder %s2738_s0, %s3088_s9 }
  0xa0   : > { %p2237_p5 = scmp.ne.s32.totalorder %s2738_s0, %s2236_s26  ;;  %p2243_p8 = scmp.lt.u32.totalorder %s2241_s30, %s2236_s26 }
  0xa1   : > { %p2245_p12 = scmp.lt.u32.totalorder %s2236_s26, %s2738_s0 }
  0xa2   : > { %p2239_p2 = pnand %p2237_p5, %p2668_p9  ;;  %p2244_p10 = por %p2243_p8, %p2242_p7 }
  0xa4   : > { %p2240_p6 = pneg %p2239_p2  ;;  %p2246_p1 = por %p2245_p12, %p2244_p10 }
  0xa6   : > { %p2247_p11 = pnand %p2246_p1, %p2240_p6 }
  0xa8   : > { %2250 = shalt.err (!%p2247_p11)
}
  0xa9   : > { %s2251_s17 = scalar_lea.vmem %s2741_s23, 1024  ;;  %s2425_s4 = smov [#allocation14]  }
  0xaa   : > { %p2252_p3 = scmp.ne.s32.totalorder %s2741_s23, %s2251_s17  ;;  %s2256_s16 = sshll.u32 %s2425_s4, 4  ;;  %s2257_s16 = int_to_ptr.vmem [resolvable:$false] %s2256_s16 }
  0xab   : > { %s2258_s7 = scalar_lea.vmem %s2257_s16, 2048  ;;  %p2259_p5 = scmp.lt.s32.totalorder %s2741_s23, %s2257_s16 }
  0xac   : > { %p2254_p13 = pnand %p2252_p3, %p2668_p9  ;;  %p2260_p2 = scmp.lt.s32.totalorder %s2258_s7, %s2251_s17 }
  0xae   : > { %p2255_p0 = pneg %p2254_p13  ;;  %p2261_p7 = por %p2260_p2, %p2259_p5 }
  0xb0   : > { %p2262_p8 = pnand %p2261_p7, %p2255_p0 }
  0xb2   : > { %2265 = shalt.err (!%p2262_p8)
}
  0xb3   : > { %1991 = dma.hbm_to_vmem [thread:$0]  (!%p2637_p4), %s2738_s0, 1024, %s2741_s23, %s2662_s8, %s3087_s22, %s3087_s22, %s3086_s13  }
  0xb4   : > { %s3089_s11 = sld [smem:[#allocation40_spill]]  ;;  %s587_s27 = scalar_lea.vmem [#allocation15], %s2693_s1 }
  0xb5   : > { %s594_s17 = sshll.u32 %s587_s27, 4  ;;  %s3090_s4 = sand.u32 1, %s2410_s24   ;;  %s2775_s17 = int_to_ptr.vmem [resolvable:$true] %s594_s17 }
  0xb6   : > { %s2779_s16 = scalar_lea.sflag [#allocation16], %s3090_s4 }
  0xba   : > { %s2772_s15 = scalar_lea.hbm %s3089_s11, %s2696_s10  ;;  %s2271_s10 = scalar_lea.hbm %s3089_s11, 3072 }
  0xbb   : > { %s2266_s7 = scalar_lea.hbm %s2772_s15, 1024  ;;  %p2272_p1 = scmp.lt.u32.totalorder %s2772_s15, %s3089_s11 }
  0xbc   : > { %p2267_p6 = scmp.ne.s32.totalorder %s2772_s15, %s2266_s7  ;;  %p2273_p11 = scmp.lt.u32.totalorder %s2271_s10, %s2266_s7 }
  0xbd   : > { %p2275_p13 = scmp.lt.u32.totalorder %s2266_s7, %s2772_s15 }
  0xbe   : > { %p2269_p10 = pnand %p2267_p6, %p2668_p9  ;;  %p2274_p3 = por %p2273_p11, %p2272_p1 }
  0xc0   : > { %p2270_p12 = pneg %p2269_p10  ;;  %p2276_p0 = por %p2275_p13, %p2274_p3 }
  0xc2   : > { %p2277_p5 = pnand %p2276_p0, %p2270_p12 }
  0xc4   : > { %2280 = shalt.err (!%p2277_p5)
}
  0xc5   : > { %s2281_s1 = scalar_lea.vmem %s2775_s17, 1024  ;;  %s2426_s30 = smov [#allocation15]  }
  0xc6   : > { %p2282_p2 = scmp.ne.s32.totalorder %s2775_s17, %s2281_s1  ;;  %s2286_s27 = sshll.u32 %s2426_s30, 4  ;;  %s2287_s27 = int_to_ptr.vmem [resolvable:$false] %s2286_s27 }
  0xc7   : > { %s2288_s4 = scalar_lea.vmem %s2287_s27, 2048  ;;  %p2289_p6 = scmp.lt.s32.totalorder %s2775_s17, %s2287_s27 }
  0xc8   : > { %p2284_p7 = pnand %p2282_p2, %p2668_p9  ;;  %p2290_p10 = scmp.lt.s32.totalorder %s2288_s4, %s2281_s1 }
  0xca   : > { %p2285_p8 = pneg %p2284_p7  ;;  %p2291_p1 = por %p2290_p10, %p2289_p6 }
  0xcc   : > { %p2292_p11 = pnand %p2291_p1, %p2285_p8 }
  0xce   : > { %2295 = shalt.err (!%p2292_p11)
}
  0xcf   : > { %1994 = dma.hbm_to_vmem [thread:$0]  (!%p2637_p4), %s2772_s15, 1024, %s2775_s17, %s2779_s16, %s3087_s22, %s3087_s22, %s3086_s13  }
  0xd0   : > { %p3091_p9 = scmp.ne.s32.totalorder %s3073_s29, 0 }
  0xd1   : > { %s614_s14 = sand.u32 (!%p3091_p9), 1, %s2386_s12   ;;  %p3092_p12 = scmp.ne.s32.totalorder (!%p3091_p9), %s3072_s28, 0 }
  0xd2   : > { %612 = sbr.rel (%p3091_p9) target bundleno = 1955 (0x7a3), region = 80  ;;  %s1706_s7 = sshll.u32 (!%p3091_p9), %s614_s14, 6 }
  0xd3   : > { %s615_s8 = scalar_lea.sflag (!%p3091_p9), [#allocation10], %s614_s14  ;;  %s2809_s0 = scalar_lea.vmem (!%p3091_p9), [#allocation9], %s1706_s7 }
  0xd9   : > { %2361 = dma.done.wait (%p3092_p12), %s615_s8, 1024  }
  0xda   : > { %2363 = vsyncadd (%p3092_p12), %s615_s8, 4294966272  ;;  %s623_s18 = sand.u32 1, %s2575_s25   ;;  %s1707_s10 = sshll.u32 %s614_s14, 5 }
  0xdb   : > { %s624_s13 = scalar_lea.sflag [#allocation13], %s623_s18  ;;  %s2816_s22 = scalar_lea.vmem [#allocation12], %s1707_s10 }
  0xdc   : > { %2365 = dma.done.wait (%p3092_p12), %s624_s13, 1536  }
  0xdd   : > { %2367 = vsyncadd (%p3092_p12), %s624_s13, 4294965760  ;;  %s2822_s29 = scalar_lea.vmem [#allocation14], %s1706_s7  ;;  %s642_s15 = scalar_lea.sflag [#allocation16], %s623_s18 }
  0xde   : > { %s2824_s17 = scalar_lea.vmem [#allocation15], %s1706_s7 }
  0xdf   : > { %2369 = dma.done.wait (%p3092_p12), %s642_s15, 1024  }
  0xe0   : > { %2371 = vsyncadd (%p3092_p12), %s642_s15, 4294966272  ;;  %p3093_p4 = scmp.eq.s32.totalorder %s2575_s25, 0 }
  0xe2   : > { %2373 = dma.done.wait (%p3093_p4), [#allocation16], 1024   ;;  %p3094_p3 = pmov %p3093_p4 }
  0xe3   : > { %p726_p13 = scmp.lt.s32.totalorder %s2394_s20, 1  ;;  %p730_p0 = scmp.lt.s32.totalorder %s2398_s21, 2 }
  0xe4   : > { %2375 = vsyncadd (%p3094_p3), [#allocation16], 4294966272  ;;  %p747_p5 = scmp.eq.s32.totalorder %s2398_s21, 0  ;;  %p748_p2 = scmp.eq.s32.totalorder %s2394_s20, 0 }
  0xe5   : > { %s727_s16 = scalar_select %p726_p13, %s2394_s20, 1 }
  0xe6   : > { %s2840_s23 = scalar_select %p730_p0, %s2398_s21, 2 }
  0xe7   : > { %s1711_s28 = sshll.u32 %s727_s16, 3  ;;  %p749_p7 = pnand %p748_p2, %p747_p5 }
  0xe8   : > { %s3095_s3 = sld [smem:[#allocation34_spill]]  ;;  %s1712_s27 = sshll.u32 %s2840_s23, 3  ;;  %vm754_vm0 = vcmask (!%p749_p7), 523264  }
  0xe9   : > { %s2851_s7 = scalar_lea.vmem %s3023_s5, %s1712_s27  ;;  %s736_s10 = scalar_lea.vmem %s3024_s6, %s2840_s23 }
  0xea   : > { %s3096_s9 = sld [smem:[#allocation37_spill]]  ;;  %s3097_s2 = sld [smem:[#allocation39_spill]] }
  0xeb   : > { %s3099_s14 = sld [smem:[#allocation33_spill]] (!%p749_p7) }
  0xee   : > { %s2845_s30 = scalar_lea.vmem %s3095_s3, %s1711_s28  ;;  %s3098_s3 = sld [smem:[#allocation41_spill]] }
  0xef   : > { %752 = sbr.rel (%p749_p7) target bundleno = 246 (0xf6), region = 104 }
  0xf0   : > { %s739_s16 = scalar_lea.vmem %s3096_s9, %s2840_s23  ;;  %s742_s26 = scalar_lea.vmem %s3097_s2, %s2840_s23 }
  0xf1   : > { %v753_v0 = vld [vmem:[%s3099_s14] sm:$0xff] (!%p749_p7) }
  0xf2   : > { %755 = vst.msk [vmem:[#allocation2] sm:$0xff] (!%p749_p7), %vm754_vm0, %v753_v0 }
  0xf4   : > { %s745_s12 = scalar_lea.vmem %s3098_s3, %s2840_s23 }
  0xf6 PF: > { %p1713_p8 = scmp.ne.s32.totalorder %s2394_s20, 0 }
  0xf7   : > { %v762_v1 = vld [vmem:[%s2809_s0] sm:$0xff] (!%p1713_p8)  ;;  %v763_v2 = vld [vmem:[%s2809_s0 + $0x8] sm:$0xff] (!%p1713_p8)  ;;  %v764_v3 = vld [vmem:[%s2809_s0 + $0x10] sm:$0xff] (!%p1713_p8)  ;;  %vm759_vm1 = vcmask (!%p1713_p8), 523264   ;;  %v2427_v4 = vmov (!%p1713_p8), 0.0|0.0   ;;  %v2428_v7 = vmov (!%p1713_p8), 0.0  }
  0xf8   : > { %758 = sbr.rel (%p1713_p8) target bundleno = 478 (0x1de), region = 108  ;;  %1902 = vmatprep.subr.bf16.mxu0 (!%p1713_p8), %v2427_v4  ;;  %v1903_v5 = vpack.c.bf16 (!%p1713_p8), %v763_v2, %v762_v1  ;;  %v765_v6 = vld [vmem:[%s2809_s0 + $0x18] sm:$0xff] (!%p1713_p8)  ;;  %760 = vst.msk [vmem:[#allocation4] sm:$0xff] (!%p1713_p8), %vm759_vm1, %v2428_v7  ;;  %vm2429_vm2 = vmmov (!%p1713_p8), 0   ;;  %v766_v9 = vld [vmem:[%s2809_s0 + $0x20] sm:$0xff] (!%p1713_p8)  ;;  %v767_v10 = vld [vmem:[%s2809_s0 + $0x28] sm:$0xff] (!%p1713_p8) }
  0xf9   : > { %1811 = vmatprep.mubr.msk.f32.mxu0 (!%p1713_p8), %vm2429_vm2, %v2428_v7  ;;  %v1906_v8 = vpack.c.bf16 (!%p1713_p8), %v765_v6, %v764_v3  ;;  %v1909_v11 = vpack.c.bf16 (!%p1713_p8), %v767_v10, %v766_v9  ;;  %v768_v12 = vld [vmem:[%s2809_s0 + $0x30] sm:$0xff] (!%p1713_p8)  ;;  %v769_v13 = vld [vmem:[%s2809_s0 + $0x38] sm:$0xff] (!%p1713_p8)  ;;  %v761_v15 = vld [vmem:[#allocation2] sm:$0xff] (!%p1713_p8) }
  0xfa   : > { %1904 = vmatpush3.bf16.msra.mxu0 (!%p1713_p8), %v1903_v5  ;;  %v1912_v14 = vpack.c.bf16 (!%p1713_p8), %v769_v13, %v768_v12 }
  0xfb   : > { %1905 = vmatprep.subr.bf16.mxu0 (!%p1713_p8), %v2427_v4 }
  0xfe   : > { %1907 = vmatpush3.bf16.msra.mxu0 (!%p1713_p8), %v1906_v8 }
  0xff   : > { %1908 = vmatprep.subr.bf16.mxu0 %v2427_v4 }
 0x102   : > { %1910 = vmatpush3.bf16.msra.mxu0 %v1909_v11 }
 0x103   : > { %1911 = vmatprep.subr.bf16.mxu0 %v2427_v4 }
 0x106   : > { %1913 = vmatpush3.bf16.msra.mxu0 %v1912_v14 }
 0x109   : > { %1812 = vmatmul.mubr.msk.f32.vlgmr.msra.gmra.mrb[0].mxu0 %vm759_vm1, %v761_v15 }
 0x1dc   : > { %v839_v16 = vpop.f32.mrb[0].mxu0 }
 0x1dd   : > { %843 = vst.msk [vmem:[#allocation3] sm:$0xff] %vm759_vm1, %v839_v16  ;;  %v1813_v17 = vpop.f32.mrb[1].mxu0 }
 0x1de PF: > { %v844_v18 = vld [vmem:[%s2845_s30] sm:$0xff]  ;;  %v2430_v19 = vmov 0   ;;  %v2431_v45 = vmov 0.0   ;;  %vm2432_vm3 = vmmov 0   ;;  %v2095_v46 = vld [vmem:[%s2816_s22 + $0x8] sm:$0xff]   ;;  %v2096_v47 = vld [vmem:[%s2816_s22 + $0x10] sm:$0xff]   ;;  %v855_v49 = vlaneseq }
 0x1df   : > { %2092 = vset.pattern.permute.xlu0 %v2430_v19  ;;  %v846_v20 = vmul.f32 -0.8, %v844_v18  ;;  %2093 = vset.pattern.permute.xlu1 %v2430_v19  ;;  %v1716_v21 = vadd.f32 -2.5, %v844_v18  ;;  %v1715_v22 = vadd.f32 -1.25, %v844_v18  ;;  %v1717_v23 = vadd.f32 -3.75, %v844_v18  ;;  %v2094_v44 = vld [vmem:[%s2816_s22] sm:$0xff]  }
 0x1e0   : > { %v1718_v24 = vadd.f32 -5.0, %v844_v18  ;;  %1814 = vmatprep.subr.bf16.mxu0 %v2431_v45  ;;  %1822 = vmatprep.mubr.msk.bf16.mxu0 %vm2432_vm3, %v2431_v45  ;;  %v2097_v48 = vld [vmem:[%s2816_s22 + $0x18] sm:$0xff]   ;;  %v856_v50 = vshrl.u32 %v855_v49, 7  ;;  %v845_v53 = vld [vmem:[%s2851_s7] sm:$0x1f]  ;;  %vm990_vm6 = vcmask 523264  }
 0x1e1   : > { %v847_v25 = vmul.f32 %v846_v20, %v844_v18  ;;  %v878_v26 = vmul.f32 -0.8, %v1716_v21  ;;  %v862_v27 = vmul.f32 -0.8, %v1715_v22  ;;  %v894_v28 = vmul.f32 -0.8, %v1717_v23  ;;  %1815 = vmatpush3.bf16.msra.mxu0 %v2094_v44 }
 0x1e2   : > { %v910_v29 = vmul.f32 -0.8, %v1718_v24  ;;  %1816 = vmatprep.subr.bf16.mxu0 %v2431_v45  ;;  %v857_v51 = vsub.s32 0, %v856_v50  ;;  %v873_v52 = vsub.s32 1, %v856_v50  ;;  %v889_v54 = vsub.s32 2, %v856_v50  ;;  %s1726_s11 = sshll.u32 %s2394_s20, 3 }
 0x1e3   : > { %v848_v30 = vmul.f32 1.442695, %v847_v25  ;;  %v879_v31 = vmul.f32 %v1716_v21, %v878_v26  ;;  %v863_v32 = vmul.f32 %v1715_v22, %v862_v27  ;;  %v895_v33 = vmul.f32 %v1717_v23, %v894_v28  ;;  %v1719_v11 = vld [vmem:[%s736_s10] ss:$0 sm:$0xff]  ;;  %s2412_s22 = smov 0  }
 0x1e4   : > { %v911_v34 = vmul.f32 %v1718_v24, %v910_v29  ;;  %v858_v56 = vrot.slane %v845_v53, %v857_v51  ;;  %v874_v57 = vrot.slane %v845_v53, %v873_v52  ;;  %v905_v58 = vsub.s32 3, %v856_v50  ;;  %v1720_v29 = vld [vmem:[%s739_s16] ss:$0 sm:$0xff] }
 0x1e5   : > { %2098 = vpow2.f32 %v848_v30  ;;  %v880_v35 = vmul.f32 1.442695, %v879_v31  ;;  %v864_v36 = vmul.f32 1.442695, %v863_v32  ;;  %v896_v37 = vmul.f32 1.442695, %v895_v33  ;;  %1817 = vmatpush3.bf16.msra.mxu0 %v2095_v46 }
 0x1e6   : > { %v912_v38 = vmul.f32 1.442695, %v911_v34  ;;  %1818 = vmatprep.subr.bf16.mxu0 %v2431_v45  ;;  %v890_v60 = vrot.slane %v845_v53, %v889_v54  ;;  %v921_v61 = vsub.s32 4, %v856_v50  ;;  %v906_v1 = vrot.slane %v845_v53, %v905_v58 }
 0x1e7   : > { %2100 = vpow2.f32 %v880_v35 }
 0x1e8   : > { %2102 = vpow2.f32 %v864_v36  ;;  %v922_v5 = vrot.slane %v845_v53, %v921_v61 }
 0x1e9   : > { %2104 = vpow2.f32 %v896_v37  ;;  %1819 = vmatpush3.bf16.msra.mxu0 %v2096_v47 }
 0x1ea   : > { %2106 = vpow2.f32 %v912_v38  ;;  %1820 = vmatprep.subr.bf16.mxu0 %v2431_v45 }
 0x1ed   : > { %1821 = vmatpush3.bf16.msra.mxu0 %v2097_v48 }
 0x1ef   : > { %v2099_v39 = vpop.eup %2098 }
 0x1f0   : > { %852 = vperm.xlu0 %2092, %v2099_v39  }
 0x1f1   : > { %v2101_v40 = vpop.eup %2100 }
 0x1f2   : > { %v2103_v41 = vpop.eup %2102  ;;  %884 = vperm.xlu1 %2093, %v2101_v40  }
 0x1f3   : > { %v2105_v42 = vpop.eup %2104 }
 0x1f4   : > { %868 = vperm.xlu0 %2092, %v2103_v41   ;;  %v2107_v43 = vpop.eup %2106 }
 0x1f6   : > { %900 = vperm.xlu1 %2093, %v2105_v42  }
 0x1f8   : > { %916 = vperm.xlu0 %2092, %v2107_v43  }
 0x26f   : > { %v853_v55 = vpop.permute.xlu0 %852 }
 0x270   : > { %v859_v63 = vmul.f32 %v858_v56, %v853_v55 }
 0x271   : > { %v885_v59 = vpop.permute.xlu1 %884 }
 0x272   : > { %v891_v3 = vmul.f32 %v890_v60, %v885_v59 }
 0x273   : > { %v869_v62 = vpop.permute.xlu0 %868 }
 0x274   : > { %v875_v0 = vmul.f32 %v874_v57, %v869_v62 }
 0x275   : > { %v901_v2 = vpop.permute.xlu1 %900 }
 0x276   : > { %v876_v4 = vadd.f32 %v875_v0, %v859_v63  ;;  %v907_v8 = vmul.f32 %v906_v1, %v901_v2 }
 0x277   : > { %v917_v6 = vpop.permute.xlu0 %916 }
 0x278   : > { %v892_v7 = vadd.f32 %v891_v3, %v876_v4  ;;  %v923_v10 = vmul.f32 %v922_v5, %v917_v6 }
 0x27a   : > { %v908_v9 = vadd.f32 %v907_v8, %v892_v7 }
 0x27c   : > { %v924_v12 = vadd.f32 %v923_v10, %v908_v9 }
 0x27e   : > { %v932_v13 = vadd.f32 %v1719_v11, %v924_v12 }
 0x280   : > { %v933_v14 = vmul.f32 0.5, %v932_v13 }
 0x282   : > { %v934_v15 = vmin.f32 %v933_v14, 14.0  ;;  %vm935_vm5 = vcmp.gt.f32.partialorder %v933_v14, 14.0 }
 0x284   : > { %v936_v16 = vmul.f32 1.442695, %v934_v15 }
 0x286   : > { %2108 = vpow2.f32 %v936_v16 }
 0x290   : > { %v2109_v17 = vpop.eup %2108 }
 0x291   : > { %v938_v18 = vadd.f32 1.0, %v2109_v17  ;;  %v941_v19 = vmul.f32 -0.5, %v2109_v17  ;;  %v944_v21 = vand.u32 2147483647, %v2109_v17 }
 0x293   : > { %2110 = vlog2.f32 %v938_v18  ;;  %v942_v20 = vadd.f32 1.0, %v941_v19  ;;  %vm945_vm4 = vcmp.lt.f32.partialorder %v944_v21, 0.0004427343 }
 0x295   : > { %v943_v24 = vmul.f32 %v2109_v17, %v942_v20 }
 0x29d   : > { %v2111_v22 = vpop.eup %2110 }
 0x29e   : > { %v940_v23 = vmul.f32 0.6931472, %v2111_v22 }
 0x2a0   : > { %v946_v25 = vsel %vm945_vm4, %v943_v24, %v940_v23 }
 0x2a1   : > { %v948_v26 = vmul.f32 2.0, %v946_v25 }
 0x2a3   : > { %v949_v27 = vsel %vm935_vm5, %v932_v13, %v948_v26 }
 0x2a4   : > { %v950_v28 = vpack.c.bf16 %v949_v27, %v949_v27 }
 0x2a6   : > { %1823 = vmatmul.mubr.msk.bf16.vlgmr.msra.gmra.mrb[0].mxu0 %vm990_vm6, %v950_v28 }
 0x379   : > { %v1028_v30 = vpop.f32.mrb[0].mxu0 }
 0x37a   : > { %v1029_v31 = vadd.f32 %v1720_v29, %v1028_v30  ;;  %v1824_v32 = vpop.f32.mrb[1].mxu0 }
 0x37b   : > { %v1031_v33 = vpop.f32.mrb[2].mxu0 }
 0x37c   : > { %v1034_v34 = vmul.f32 0.5, %v1029_v31  ;;  %v1825_v35 = vpop.f32.mrb[3].mxu0 }
 0x37e   : > { %v1035_v36 = vmin.f32 %v1034_v34, 14.0  ;;  %vm1036_vm8 = vcmp.gt.f32.partialorder %v1034_v34, 14.0 }
 0x380   : > { %v1037_v37 = vmul.f32 1.442695, %v1035_v36 }
 0x382   : > { %2112 = vpow2.f32 %v1037_v37 }
 0x38c   : > { %v2113_v38 = vpop.eup %2112 }
 0x38d   : > { %v1039_v39 = vadd.f32 1.0, %v2113_v38  ;;  %v1042_v40 = vmul.f32 -0.5, %v2113_v38  ;;  %v1045_v42 = vand.u32 2147483647, %v2113_v38 }
 0x38f   : > { %2114 = vlog2.f32 %v1039_v39  ;;  %v1043_v41 = vadd.f32 1.0, %v1042_v40  ;;  %vm1046_vm7 = vcmp.lt.f32.partialorder %v1045_v42, 0.0004427343 }
 0x391   : > { %v1044_v45 = vmul.f32 %v2113_v38, %v1043_v41 }
 0x399   : > { %v2115_v43 = vpop.eup %2114 }
 0x39a   : > { %v1041_v44 = vmul.f32 0.6931472, %v2115_v43 }
 0x39c   : > { %v1047_v46 = vsel %vm1046_vm7, %v1044_v45, %v1041_v44 }
 0x39d   : > { %v1048_v47 = vmul.f32 2.0, %v1047_v46 }
 0x39f   : > { %v1049_v48 = vsel %vm1036_vm8, %v1029_v31, %v1048_v47 }
 0x3a0   : > { %1050 = vst.msk [vmem:[#allocation5] sm:$0xff] %vm990_vm6, %v1049_v48 }
 0x3a1 LB: >> { %s1058_s30 = sadd.s32 %s2414_s22, %s1726_s11  ;;  %s1068_s18 = scalar_lea.vmem [#allocation5], %s2414_s22  ;;  %vm1076_vm9 = vcmask 516096   ;;  %s2414_s22 = sphi %s2412_s22, %s1057_s22  }
 0x3a2   : >> { %s1059_s7 = sld [smem:[#allocation7 + %s1058_s30]]  ;;  %s1057_s22 = sadd.s32 1, %s2414_s22  }
 0x3a3   : >> { %s1060_s8 = sld [smem:[#allocation8 + %s1058_s30]]  ;;  %p1054_p1 = scmp.ge.s32.totalorder %s1057_s22, 8  }
 0x3a4   : > { %p1078_p11 = scmp.eq.s32.totalorder (%p1054_p1), %s2394_s20, 1  ;;  %p1727_p9 = scmp.ne.s32.totalorder (%p1054_p1), %s2394_s20, 1 }
 0x3a7   : >> { %v1069_v49 = vld [vmem:[%s1068_s18] sm:$0x1] }
 0x3a8   : >> { %s1066_s13 = scalar_lea.vmem [#allocation3], %s1059_s7 }
 0x3a9   : >> { %p1061_p6 = scmp.ge.s32.totalorder %s1060_s8, 0  ;;  %p1064_p10 = scmp.gt.s32.totalorder %s1060_s8, 0  ;;  %v1067_v50 = vld [vmem:[%s1066_s13] sm:$0x1] }
 0x3aa   : >> { %v1070_v51 = vmul.f32 %v1069_v49, %v1067_v50 }
 0x3ab   : >> { %s1062_s10 = scalar_select %p1061_p6, 1, 0 }
 0x3ac   : >> { %s3121_s8 = smov (!%p1064_p10, %s1060_s8), 0 }
 0x3ad   : >> { %s1063_s15 = scvt.s32.f32 %s1062_s10  ;;  %s1073_s16 = scalar_lea.vmem [#allocation4], %s3121_s8 }
 0x3ae   : >> { %v1074_v53 = vld [vmem:[%s1073_s16] sm:$0x1]  ;;  %1056 = sbr.rel (!%p1054_p1) target bundleno = 929 (0x3a1), region = 202 }
 0x3af   : >> { %v1071_v52 = vstv %s1063_s15 }
 0x3b0   : >> { %v1072_v54 = vmul.f32 %v1071_v52, %v1070_v51 }
 0x3b2   : >> { %v1075_v55 = vadd.f32 %v1074_v53, %v1072_v54 }
 0x3b4   : >> { %1077 = vst.msk [vmem:[%s1073_s16] sm:$0x1] %vm1076_vm9, %v1075_v55 }
 0x3b5   : > { %1081 = sbr.rel (%p1727_p9) target bundleno = 1434 (0x59a), region = 119  ;;  %v1083_v56 = vld [vmem:[%s2822_s29] sm:$0xff] (!%p1727_p9)  ;;  %v1084_v57 = vld [vmem:[%s2822_s29 + $0x8] sm:$0xff] (!%p1727_p9)  ;;  %v1085_v58 = vld [vmem:[%s2822_s29 + $0x10] sm:$0xff] (!%p1727_p9)  ;;  %v2433_v59 = vmov (!%p1727_p9), 0.0|0.0   ;;  %vm2434_vm10 = vmmov (!%p1727_p9), 0  }
 0x3b6   : > { %1914 = vmatprep.subr.bf16.mxu0 (!%p1727_p9), %v2433_v59  ;;  %v1915_v60 = vpack.c.bf16 (!%p1727_p9), %v1084_v57, %v1083_v56  ;;  %v1086_v61 = vld [vmem:[%s2822_s29 + $0x18] sm:$0xff] (!%p1727_p9)  ;;  %v2435_v62 = vmov (!%p1727_p9), 0.0   ;;  %1926 = vmatprep.subr.bf16.mxu1 (!%p1727_p9), %v2433_v59  ;;  %v1087_v0 = vld [vmem:[%s2822_s29 + $0x20] sm:$0xff] (!%p1727_p9)  ;;  %v1088_v1 = vld [vmem:[%s2822_s29 + $0x28] sm:$0xff] (!%p1727_p9) }
 0x3b7   : > { %1842 = vmatprep.mubr.msk.f32.mxu0 (!%p1727_p9), %vm2434_vm10, %v2435_v62  ;;  %1861 = vmatprep.mubr.msk.f32.mxu1 (!%p1727_p9), %vm2434_vm10, %v2435_v62  ;;  %v1918_v63 = vpack.c.bf16 (!%p1727_p9), %v1086_v61, %v1085_v58  ;;  %v1921_v2 = vpack.c.bf16 (!%p1727_p9), %v1088_v1, %v1087_v0  ;;  %v1089_v3 = vld [vmem:[%s2822_s29 + $0x30] sm:$0xff] (!%p1727_p9)  ;;  %v1090_v4 = vld [vmem:[%s2822_s29 + $0x38] sm:$0xff] (!%p1727_p9)  ;;  %v1188_v7 = vld [vmem:[%s2824_s17] sm:$0xff] (!%p1727_p9) }
 0x3b8   : > { %1916 = vmatpush3.bf16.msra.mxu0 (!%p1727_p9), %v1915_v60  ;;  %v1924_v5 = vpack.c.bf16 (!%p1727_p9), %v1090_v4, %v1089_v3  ;;  %v1189_v8 = vld [vmem:[%s2824_s17 + $0x8] sm:$0xff] (!%p1727_p9)  ;;  %v1190_v9 = vld [vmem:[%s2824_s17 + $0x10] sm:$0xff] (!%p1727_p9)  ;;  %v1191_v11 = vld [vmem:[%s2824_s17 + $0x18] sm:$0xff] (!%p1727_p9) }
 0x3b9   : > { %1917 = vmatprep.subr.bf16.mxu0 (!%p1727_p9), %v2433_v59  ;;  %v1927_v10 = vpack.c.bf16 (!%p1727_p9), %v1189_v8, %v1188_v7  ;;  %v1930_v12 = vpack.c.bf16 (!%p1727_p9), %v1191_v11, %v1190_v9  ;;  %v1192_v13 = vld [vmem:[%s2824_s17 + $0x20] sm:$0xff] (!%p1727_p9)  ;;  %v1193_v14 = vld [vmem:[%s2824_s17 + $0x28] sm:$0xff] (!%p1727_p9)  ;;  %v1194_v16 = vld [vmem:[%s2824_s17 + $0x30] sm:$0xff] (!%p1727_p9) }
 0x3ba   : > { %v1933_v15 = vpack.c.bf16 (!%p1727_p9), %v1193_v14, %v1192_v13  ;;  %v1195_v17 = vld [vmem:[%s2824_s17 + $0x38] sm:$0xff] (!%p1727_p9)  ;;  %v1728_v19 = vld [vmem:[%s742_s26] ss:$0 sm:$0xff] (!%p1727_p9) }
 0x3bb   : > { %v1082_v6 = vld [vmem:[#allocation4] sm:$0xff] (!%p1727_p9)  ;;  %1928 = vmatpush3.bf16.msra.mxu1 (!%p1727_p9), %v1927_v10  ;;  %v1936_v18 = vpack.c.bf16 (!%p1727_p9), %v1195_v17, %v1194_v16  ;;  %v1187_v37 = vld [vmem:[#allocation2] sm:$0xff] (!%p1727_p9) }
 0x3bc   : > { %1919 = vmatpush3.bf16.msra.mxu0 %v1918_v63  ;;  %1929 = vmatprep.subr.bf16.mxu1 %v2433_v59  ;;  %v1731_v39 = vld [vmem:[%s745_s12] ss:$0 sm:$0xff] }
 0x3bd   : > { %1920 = vmatprep.subr.bf16.mxu0 %v2433_v59 }
 0x3bf   : > { %1931 = vmatpush3.bf16.msra.mxu1 %v1930_v12 }
 0x3c0   : > { %1922 = vmatpush3.bf16.msra.mxu0 %v1921_v2  ;;  %1932 = vmatprep.subr.bf16.mxu1 %v2433_v59 }
 0x3c1   : > { %1923 = vmatprep.subr.bf16.mxu0 %v2433_v59 }
 0x3c3   : > { %1934 = vmatpush3.bf16.msra.mxu1 %v1933_v15 }
 0x3c4   : > { %1925 = vmatpush3.bf16.msra.mxu0 %v1924_v5  ;;  %1935 = vmatprep.subr.bf16.mxu1 %v2433_v59 }
 0x3c7   : > { %1843 = vmatmul.mubr.msk.f32.vlgmr.msra.gmra.mrb[0].mxu0 %vm990_vm6, %v1082_v6  ;;  %1937 = vmatpush3.bf16.msra.mxu1 %v1936_v18 }
 0x49a   : > { %v1167_v20 = vpop.f32.mrb[0].mxu0 }
 0x49b   : > { %v1168_v21 = vadd.f32 %v1728_v19, %v1167_v20  ;;  %v1844_v22 = vpop.f32.mrb[1].mxu0 }
 0x49d   : > { %v1171_v23 = vmul.f32 0.5, %v1168_v21 }
 0x49f   : > { %v1172_v24 = vmin.f32 %v1171_v23, 14.0  ;;  %vm1173_vm12 = vcmp.gt.f32.partialorder %v1171_v23, 14.0 }
 0x4a1   : > { %v1174_v25 = vmul.f32 1.442695, %v1172_v24 }
 0x4a3   : > { %2116 = vpow2.f32 %v1174_v25 }
 0x4ad   : > { %v2117_v26 = vpop.eup %2116 }
 0x4ae   : > { %v1176_v27 = vadd.f32 1.0, %v2117_v26  ;;  %v1179_v28 = vmul.f32 -0.5, %v2117_v26  ;;  %v1182_v30 = vand.u32 2147483647, %v2117_v26 }
 0x4b0   : > { %2118 = vlog2.f32 %v1176_v27  ;;  %v1180_v29 = vadd.f32 1.0, %v1179_v28  ;;  %vm1183_vm11 = vcmp.lt.f32.partialorder %v1182_v30, 0.0004427343 }
 0x4b2   : > { %v1181_v33 = vmul.f32 %v2117_v26, %v1180_v29 }
 0x4ba   : > { %v2119_v31 = vpop.eup %2118 }
 0x4bb   : > { %v1178_v32 = vmul.f32 0.6931472, %v2119_v31 }
 0x4bd   : > { %v1184_v34 = vsel %vm1183_vm11, %v1181_v33, %v1178_v32 }
 0x4be   : > { %v1185_v35 = vmul.f32 2.0, %v1184_v34 }
 0x4c0   : > { %v1186_v36 = vsel %vm1173_vm12, %v1168_v21, %v1185_v35 }
 0x4c1   : > { %1862 = vmatmul.mubr.msk.f32.vlgmr.msra.gmra.mrb[0].mxu1 %vm990_vm6, %v1186_v36 }
 0x594   : > { %v1265_v38 = vpop.f32.mrb[0].mxu1 }
 0x595   : > { %v1269_v40 = vadd.f32 %v1265_v38, %v1187_v37  ;;  %v1863_v41 = vpop.f32.mrb[1].mxu1 }
 0x597   : > { %v1277_v42 = vadd.f32 %v1731_v39, %v1269_v40 }
 0x599   : > { %1278 = vst.msk [vmem:[#allocation2] sm:$0xff] %vm990_vm6, %v1277_v42 }
 0x59a PF: > { %p1279_p12 = scmp.eq.s32.totalorder %s2398_s21, 2 }
 0x59c   : > { %p1280_p4 = pnand %p1279_p12, %p1078_p11 }
 0x59d   : > { %s3103_s3 = sld [smem:[#allocation42_spill]] (!%p1280_p4)  ;;  %v2436_v46 = vmov (!%p1280_p4), 0.0|0.0   ;;  %vm2437_vm13 = vmmov (!%p1280_p4), 0   ;;  %v2438_v49 = vmov (!%p1280_p4), 0.0   ;;  %v1388_v58 = vld [vmem:[#allocation17] sm:$0xff] (!%p1280_p4)  ;;  %v1389_v59 = vld [vmem:[#allocation17 + $0x8] sm:$0xff] (!%p1280_p4) }
 0x59e   : > { %1283 = sbr.rel (%p1280_p4) target bundleno = 1924 (0x784), region = 123  ;;  %1938 = vmatprep.subr.bf16.mxu0 (!%p1280_p4), %v2436_v46  ;;  %1880 = vmatprep.mubr.msk.f32.mxu0 (!%p1280_p4), %vm2437_vm13, %v2438_v49  ;;  %v1390_v60 = vld [vmem:[#allocation17 + $0x10] sm:$0xff] (!%p1280_p4)  ;;  %v1951_v61 = vpack.c.bf16 (!%p1280_p4), %v1389_v59, %v1388_v58  ;;  %v1391_v62 = vld [vmem:[#allocation17 + $0x18] sm:$0xff] (!%p1280_p4)  ;;  %v1392_v0 = vld [vmem:[#allocation17 + $0x20] sm:$0xff] (!%p1280_p4)  ;;  %s3104_s15 = sld [smem:[#allocation43_spill]] (!%p1280_p4) }
 0x59f   : > { %1950 = vmatprep.subr.bf16.mxu1 (!%p1280_p4), %v2436_v46  ;;  %1899 = vmatprep.mubr.msk.f32.mxu1 (!%p1280_p4), %vm2437_vm13, %v2438_v49  ;;  %v1954_v63 = vpack.c.bf16 (!%p1280_p4), %v1391_v62, %v1390_v60  ;;  %v1393_v1 = vld [vmem:[#allocation17 + $0x28] sm:$0xff] (!%p1280_p4)  ;;  %v1394_v3 = vld [vmem:[#allocation17 + $0x30] sm:$0xff] (!%p1280_p4)  ;;  %v1395_v4 = vld [vmem:[#allocation17 + $0x38] sm:$0xff] (!%p1280_p4)  ;;  %s3105_s28 = sld [smem:[#allocation45_spill]] (!%p1280_p4) }
 0x5a0   : > { %v1284_v57 = vld [vmem:[#allocation2] sm:$0xff] (!%p1280_p4)  ;;  %1952 = vmatpush3.bf16.msra.mxu1 (!%p1280_p4), %v1951_v61  ;;  %v1957_v2 = vpack.c.bf16 (!%p1280_p4), %v1393_v1, %v1392_v0  ;;  %v1960_v5 = vpack.c.bf16 (!%p1280_p4), %v1395_v4, %v1394_v3 }
 0x5a1   : > { %1953 = vmatprep.subr.bf16.mxu1 (!%p1280_p4), %v2436_v46 }
 0x5a3   : > { %v1285_v43 = vld [vmem:[%s3103_s3] sm:$0xff] (!%p1280_p4)  ;;  %v1286_v44 = vld [vmem:[%s3103_s3 + $0x8] sm:$0xff] (!%p1280_p4)  ;;  %v1287_v45 = vld [vmem:[%s3103_s3 + $0x10] sm:$0xff] (!%p1280_p4) }
 0x5a4   : > { %v1939_v47 = vpack.c.bf16 (!%p1280_p4), %v1286_v44, %v1285_v43  ;;  %v1288_v48 = vld [vmem:[%s3103_s3 + $0x18] sm:$0xff] (!%p1280_p4)  ;;  %v1289_v51 = vld [vmem:[%s3103_s3 + $0x20] sm:$0xff] (!%p1280_p4)  ;;  %v1290_v52 = vld [vmem:[%s3103_s3 + $0x28] sm:$0xff] (!%p1280_p4)  ;;  %1955 = vmatpush3.bf16.msra.mxu1 (!%p1280_p4), %v1954_v63 }
 0x5a5   : > { %v1942_v50 = vpack.c.bf16 %v1288_v48, %v1287_v45  ;;  %v1945_v53 = vpack.c.bf16 %v1290_v52, %v1289_v51  ;;  %v1291_v54 = vld [vmem:[%s3103_s3 + $0x30] sm:$0xff]  ;;  %v1292_v55 = vld [vmem:[%s3103_s3 + $0x38] sm:$0xff]  ;;  %1956 = vmatprep.subr.bf16.mxu1 %v2436_v46  ;;  %v1732_v6 = vld [vmem:[%s3104_s15] ss:$0 sm:$0xff] }
 0x5a6   : > { %1940 = vmatpush3.bf16.msra.mxu0 %v1939_v47  ;;  %v1948_v56 = vpack.c.bf16 %v1292_v55, %v1291_v54  ;;  %v1735_v23 = vld [vmem:[%s3105_s28] ss:$0 sm:$0xff] }
 0x5a7   : > { %1941 = vmatprep.subr.bf16.mxu0 %v2436_v46 }
 0x5a8   : > { %1958 = vmatpush3.bf16.msra.mxu1 %v1957_v2 }
 0x5a9   : > { %1959 = vmatprep.subr.bf16.mxu1 %v2436_v46 }
 0x5aa   : > { %1943 = vmatpush3.bf16.msra.mxu0 %v1942_v50 }
 0x5ab   : > { %1944 = vmatprep.subr.bf16.mxu0 %v2436_v46 }
 0x5ac   : > { %1961 = vmatpush3.bf16.msra.mxu1 %v1960_v5 }
 0x5ae   : > { %1946 = vmatpush3.bf16.msra.mxu0 %v1945_v53 }
 0x5af   : > { %1947 = vmatprep.subr.bf16.mxu0 %v2436_v46 }
 0x5b2   : > { %1949 = vmatpush3.bf16.msra.mxu0 %v1948_v56 }
 0x5b5   : > { %1881 = vmatmul.mubr.msk.f32.vlgmr.msra.gmra.mrb[0].mxu0 %vm990_vm6, %v1284_v57 }
 0x688   : > { %v1369_v7 = vpop.f32.mrb[0].mxu0 }
 0x689   : > { %v1370_v8 = vadd.f32 %v1732_v6, %v1369_v7  ;;  %v1882_v9 = vpop.f32.mrb[1].mxu0 }
 0x68b   : > { %v1373_v10 = vmin.f32 %v1370_v8, 20.0  ;;  %vm1374_vm15 = vcmp.gt.f32.partialorder %v1370_v8, 20.0 }
 0x68d   : > { %v1375_v11 = vmul.f32 1.442695, %v1373_v10 }
 0x68f   : > { %2120 = vpow2.f32 %v1375_v11 }
 0x699   : > { %v2121_v12 = vpop.eup %2120 }
 0x69a   : > { %v1377_v13 = vadd.f32 1.0, %v2121_v12  ;;  %v1380_v14 = vmul.f32 -0.5, %v2121_v12  ;;  %v1383_v16 = vand.u32 2147483647, %v2121_v12 }
 0x69c   : > { %2122 = vlog2.f32 %v1377_v13  ;;  %v1381_v15 = vadd.f32 1.0, %v1380_v14  ;;  %vm1384_vm14 = vcmp.lt.f32.partialorder %v1383_v16, 0.0004427343 }
 0x69e   : > { %v1382_v19 = vmul.f32 %v2121_v12, %v1381_v15 }
 0x6a6   : > { %v2123_v17 = vpop.eup %2122 }
 0x6a7   : > { %v1379_v18 = vmul.f32 0.6931472, %v2123_v17 }
 0x6a9   : > { %v1385_v20 = vsel %vm1384_vm14, %v1382_v19, %v1379_v18 }
 0x6aa   : > { %v1386_v21 = vsel %vm1374_vm15, %v1370_v8, %v1385_v20 }
 0x6ab   : > { %v1734_v22 = vadd.f32 -0.6931472, %v1386_v21 }
 0x6ad   : > { %1900 = vmatmul.mubr.msk.f32.vlgmr.msra.gmra.mrb[0].mxu1 %vm990_vm6, %v1734_v22 }
 0x780   : > { %v1472_v24 = vpop.f32.mrb[0].mxu1 }
 0x781   : > { %v1473_v25 = vadd.f32 %v1735_v23, %v1472_v24  ;;  %v1901_v26 = vpop.f32.mrb[1].mxu1 }
 0x783   : > { %1476 = vst.msk [vmem:[#allocation18] sm:$0xff] %vm990_vm6, %v1473_v25 }
 0x784 PF: > { %p1998_p3 = scmp.eq.s32.totalorder %s2575_s25, 5  ;;  %s2439_s1 = smov [#allocation18]  }
 0x785   : > { %s1484_s17 = sshll.u32 %s2439_s1, 4  ;;  %s1485_s17 = int_to_ptr.vmem [resolvable:$true] %s1484_s17 }
 0x786   : > { %s2296_s26 = scalar_lea.vmem %s1485_s17, 128  ;;  %p2303_p2 = scmp.lt.s32.totalorder %s1485_s17, %s1485_s17 }
 0x787   : > { %p2297_p13 = scmp.ne.s32.totalorder %s1485_s17, %s2296_s26  ;;  %p2304_p7 = scmp.lt.s32.totalorder %s2296_s26, %s2296_s26 }
 0x789   : > { %p2298_p0 = pnand %p2297_p13, %p1998_p3  ;;  %p2305_p8 = por %p2304_p7, %p2303_p2 }
 0x78b   : > { %p2299_p5 = pneg %p2298_p0 }
 0x78d   : > { %p2306_p6 = pnand %p2305_p8, %p2299_p5 }
 0x78f   : > { %2309 = shalt.err (!%p2306_p6)
}
 0x790   : > { %s3106_s14 = sld [smem:[#allocation46_spill]] }
 0x796   : > { %s2310_s9 = scalar_lea.hbm %s3106_s14, 128 }
 0x797   : > { %p2311_p10 = scmp.ne.s32.totalorder %s3106_s14, %s2310_s9  ;;  %p2316_p9 = scmp.lt.u32.totalorder %s2310_s9, %s3106_s14 }
 0x799   : > { %p2312_p1 = pnand %p2311_p10, %p1998_p3 }
 0x79b   : > { %p2313_p11 = pneg %p2312_p1 }
 0x79d   : > { %p2318_p12 = pnand %p2316_p9, %p2313_p11 }
 0x79f   : > { %2321 = shalt.err (!%p2318_p12)
}
 0x7a0   : > { %1975 = dma.vmem_to_hbm [thread:$0]  (%p1998_p3), %s1485_s17, 128, %s3106_s14, [#allocation11]  }
 0x7a1   : > { %2377 = dma.done.wait (%p1998_p3), [#allocation11], 128  }
 0x7a2   : > { %2379 = vsyncadd (%p1998_p3), [#allocation11], 4294967168 }
 0x7a3 PF: > { %s47_s24 = sadd.s32 1, %s2410_s24   ;;  %s3107_s1 = sld [smem:[#allocation25_spill]] }
 0x7a4   : > { %p44_p4 = scmp.ge.s32.totalorder %s47_s24, 8   ;;  %s3108_s12 = sld [smem:[#allocation26_spill]] }
 0x7a5   : > { %s3109_s2 = sld [smem:[#allocation31_spill]]  ;;  %s3110_s20 = sld [smem:[#allocation27_spill]] }
 0x7a6   : > { %s3111_s21 = sld [smem:[#allocation28_spill]]  ;;  %s3112_s22 = sld [smem:[#allocation29_spill]] }
 0x7a7   : > { %s3113_s23 = sld [smem:[#allocation30_spill]]  ;;  %46 = sbr.rel (!%p44_p4) target bundleno = 46 (0x2e), region = 213 }
 0x7ae   :  { %1497 = vsyncpa [#allocation10], 1 }
 0x7af   :  { %1499 = vsyncpa [#allocation10 + $0x1], 1 }
 0x7b0   :  { %1500 = vsyncpa [#allocation13], 1 }
 0x7b1   :  { %1502 = vsyncpa [#allocation13 + $0x1], 1 }
 0x7b2   :  { %1503 = vsyncpa [#allocation16], 1 }
 0x7b3   :  { %1505 = vsyncpa [#allocation16 + $0x1], 1 }
 0x7b4   :  { %1506 = vsyncpa [#allocation11], 1 }
 0x7b5   :  { %1508 = vsyncpa [#allocation11 + $0x1], 1 }

</bundles_post_ra>
